<compile_context>
chip_gen: v6e
topology: v6e:2x2x1
jax: 0.10.0
libtpu: 0.0.40
codegen_flags: <defaults>
</compile_context>

<pallas_src>
import jax
import jax.numpy as jnp
from jax.experimental import pallas as pl
from jax.experimental.pallas import tpu as pltpu

_COMPUTE_DTYPE = jnp.bfloat16

_PARAM_ORDER = ("m1", "b1", "p1m", "m2", "b2", "p2m",
                "wf1", "bf1", "wf2", "bf2", "wf3", "bf3")


# ----------------------------------------------------------------------------
# Fused kernel
#
# Row layout:   row = b*8 + q                    (8 row-groups per image)
# conv1 out:    lane = dh*336 + e*168 + c*28 + ow    (oh = 4q + 2e + dh)
# pool1 out:    lane = e*84  + c*14 + s              (r  = 2q + e)
# conv2 out:    lane = dh*160 + c2*10 + ow2          (oh2 = 2q + dh, q == r2)
# pool2 out:    lane = c2*5 + s2                     (valid rows q = r2 in 0..4)
# fc stack:     valid result in row b*8 + 0; rows 1..7 carry harmless garbage.
# ----------------------------------------------------------------------------
def _lenet_kernel(x_ref, m1_ref, b1_ref, p1m_ref, m2_ref, b2_ref, p2m_ref,
                  wf1_ref, bf1_ref, wf2_ref, bf2_ref, wf3_ref, bf3_ref,
                  out_ref):
    f32 = jnp.float32
    cdt = m1_ref.dtype                         # bf16 compute dtype

    # "Shift towards index 0" helpers (wrap only pollutes rows/lanes that are
    # discarded later).  These lower to XLU sublane/lane shifts, not matmuls.
    def shift_rows(t, k):
        if k == 0:
            return t
        return jnp.concatenate([t[k:, :], t[:k, :]], axis=0)

    def shift_lanes(t, k):
        return jnp.concatenate([t[:, k:], t[:, :k]], axis=1)

    # ---- conv1 + bias + ReLU + 2x2 max pool ------------------------------
    x = x_ref[...]                                                  # (R, 128)
    lhs1 = jnp.concatenate([x, shift_rows(x, 1)], axis=1)           # (R, 256)
    h1 = jnp.dot(lhs1.astype(cdt), m1_ref[...],
                 preferred_element_type=f32) + b1_ref[...]          # (R, 672)
    h1 = jnp.maximum(h1, 0.0)
    v1 = jnp.maximum(h1[:, :336], h1[:, 336:])                      # pool rows
    hm1 = jnp.maximum(v1, shift_lanes(v1, 1))                       # pool cols
    p1 = jnp.dot(hm1.astype(cdt), p1m_ref[...],
                 preferred_element_type=f32)                        # (R, 168)

    # ---- conv2 + bias + ReLU + 2x2 max pool ------------------------------
    lhs2 = jnp.concatenate(
        [p1, shift_rows(p1, 1), shift_rows(p1, 2)], axis=1)         # (R, 504)
    h2 = jnp.dot(lhs2.astype(cdt), m2_ref[...],
                 preferred_element_type=f32) + b2_ref[...]          # (R, 320)
    h2 = jnp.maximum(h2, 0.0)
    v2 = jnp.maximum(h2[:, :160], h2[:, 160:])
    hm2 = jnp.maximum(v2, shift_lanes(v2, 1))
    p2 = jnp.dot(hm2.astype(cdt), p2m_ref[...],
                 preferred_element_type=f32)                        # (R, 80)

    # ---- fc1 -> fc2 -> fc3 (valid result lives in row b*8 + 0) ----------
    lhs3 = jnp.concatenate(
        [shift_rows(p2, r) for r in range(5)], axis=1)              # (R, 400)
    y = jnp.dot(lhs3.astype(cdt), wf1_ref[...],
                preferred_element_type=f32) + bf1_ref[...]          # (R, 120)
    y = jnp.maximum(y, 0.0)
    y = jnp.dot(y.astype(cdt), wf2_ref[...],
                preferred_element_type=f32) + bf2_ref[...]          # (R, 84)
    y = jnp.maximum(y, 0.0)
    y = jnp.dot(y.astype(cdt), wf3_ref[...],
                preferred_element_type=f32) + bf3_ref[...]          # (R, 128)
    out_ref[...] = y                                                # lane-dense store


# ----------------------------------------------------------------------------
# Parameter pre-packing (pure JAX, run once outside the forward)
# ----------------------------------------------------------------------------
def _conv1_matrix(w):
    """w: (6,1,5,5) -> (256, 672) Toeplitz matrix.
    K index = j*32 + iw  (input row ih = 4*q + j),
    N index = dh*336 + e*168 + c*28 + ow  (output row oh = 4*q + 2e + dh)."""
    w0 = w[:, 0, :, :]                                   # (6, 5, 5)
    k = jnp.arange(8 * 32)
    j, iw = k // 32, k % 32
    n = jnp.arange(2 * 2 * 6 * 28)
    dh, rem = n // 336, n % 336
    e, rem = rem // 168, rem % 168
    c, ow = rem // 28, rem % 28
    kh = j[:, None] - 2 * e[None, :] - dh[None, :]
    kw = iw[:, None] - ow[None, :]
    valid = (kh >= 0) & (kh < 5) & (kw >= 0) & (kw < 5)
    vals = w0[c[None, :], jnp.clip(kh, 0, 4), jnp.clip(kw, 0, 4)]
    return jnp.where(valid, vals, 0.0)


def _conv2_matrix(w):
    """w: (16,6,5,5) -> (504, 320) Toeplitz matrix.
    K index = m*168 + e*84 + c*14 + s   (pool1 row ph = 2*(q+m) + e),
    N index = dh*160 + c2*10 + ow2      (conv2 row oh2 = 2*q + dh)."""
    k = jnp.arange(3 * 168)
    m, rem = k // 168, k % 168
    e, rem = rem // 84, rem % 84
    c, s = rem // 14, rem % 14
    n = jnp.arange(2 * 16 * 10)
    dh, rem2 = n // 160, n % 160
    c2, ow2 = rem2 // 10, rem2 % 10
    kh = 2 * m[:, None] + e[:, None] - dh[None, :]
    kw = s[:, None] - ow2[None, :]
    valid = (kh >= 0) & (kh < 5) & (kw >= 0) & (kw < 5)
    vals = w[c2[None, :], c[:, None], jnp.clip(kh, 0, 4), jnp.clip(kw, 0, 4)]
    return jnp.where(valid, vals, 0.0)


def _pool_compact(groups, width):
    """(groups*width, groups*width//2) 0/1 matrix: lane g*width + 2s -> g*(width//2) + s."""
    k = jnp.arange(groups * width)
    gk, wk = k // width, k % width
    n = jnp.arange(groups * (width // 2))
    gn, sn = n // (width // 2), n % (width // 2)
    return ((gk[:, None] == gn[None, :]) &
            (wk[:, None] == 2 * sn[None, :])).astype(jnp.float32)


def prepare_params(params, compute_dtype=_COMPUTE_DTYPE):
    f32 = jnp.float32
    m1 = _conv1_matrix(params["conv1_w"].astype(f32)).astype(compute_dtype)
    b1 = jnp.tile(jnp.repeat(params["conv1_b"].astype(f32), 28), 4).reshape(1, 672)
    p1m = _pool_compact(12, 28).astype(compute_dtype)                  # (336, 168)
    m2 = _conv2_matrix(params["conv2_w"].astype(f32)).astype(compute_dtype)
    b2 = jnp.tile(jnp.repeat(params["conv2_b"].astype(f32), 10), 2).reshape(1, 320)
    p2m = _pool_compact(16, 10).astype(compute_dtype)                  # (160, 80)

    # fc1: map torch feature order (c2*25 + r*5 + s2) to kernel lane order (r*80 + c2*5 + s2).
    q = jnp.arange(400)
    r, rem = q // 80, q % 80
    c2, s2 = rem // 5, rem % 5
    perm = c2 * 25 + r * 5 + s2
    wf1 = params["fc1_w"].astype(f32).T[perm].astype(compute_dtype)    # (400, 120)
    bf1 = params["fc1_b"].astype(f32).reshape(1, -1)
    wf2 = params["fc2_w"].astype(f32).T.astype(compute_dtype)          # (120, 84)
    bf2 = params["fc2_b"].astype(f32).reshape(1, -1)
    wf3 = jnp.zeros((84, 128), f32).at[:, :10].set(
        params["fc3_w"].astype(f32).T).astype(compute_dtype)           # (84, 128)
    bf3 = jnp.zeros((1, 128), f32).at[0, :10].set(params["fc3_b"].astype(f32))
    return dict(m1=m1, b1=b1, p1m=p1m, m2=m2, b2=b2, p2m=p2m,
                wf1=wf1, bf1=bf1, wf2=wf2, bf2=bf2, wf3=wf3, bf3=bf3)


# ----------------------------------------------------------------------------
# Fused forward
# ----------------------------------------------------------------------------
def _batch_block(b):
    """Largest divisor of b, capped at 32, chosen so the grid has >= 2 steps
    whenever b > 1 (v7x megacore); never produces a giant single block."""
    cap = min(32, b // 2) if b > 1 else 1
    bb = 1
    for cand in range(1, cap + 1):
        if b % cand == 0:
            bb = cand
    return bb


@jax.jit
def lenet_forward(prepped, x):
    b = x.shape[0]
    # Free reshape: row = image*8 + ih//4, lane = (ih%4)*32 + iw.
    xr = x.reshape(b * 8, 128).astype(jnp.float32)
    bb = _batch_block(b)
    rows = bb * 8
    grid = (b // bb,)

    def wspec(shape):
        return pl.BlockSpec(shape, lambda i, _n=len(shape): (0,) * _n)

    out = pl.pallas_call(
        _lenet_kernel,
        out_shape=jax.ShapeDtypeStruct((b * 8, 128), jnp.float32),
        grid=grid,
        in_specs=[pl.BlockSpec((rows, 128), lambda i: (i, 0))]
                 + [wspec(prepped[k].shape) for k in _PARAM_ORDER],
        out_specs=pl.BlockSpec((rows, 128), lambda i: (i, 0)),
        compiler_params=pltpu.CompilerParams(
            dimension_semantics=("parallel",)),
    )(xr, *[prepped[k] for k in _PARAM_ORDER])
    # Valid logits: row b*8 + 0, lanes 0:10.
    return out.reshape(b, 8, 128)[:, 0, :10]


# ----------------------------------------------------------------------------
# Reference (plain XLA) and synthetic parameters
# ----------------------------------------------------------------------------
def _reference_forward(params, x):
    dn = ("NCHW", "OIHW", "NCHW")
    h = jax.lax.conv_general_dilated(x, params["conv1_w"], (1, 1), "VALID",
                                     dimension_numbers=dn)
    h = jax.nn.relu(h + params["conv1_b"][None, :, None, None])
    h = jax.lax.reduce_window(h, -jnp.inf, jax.lax.max, (1, 1, 2, 2), (1, 1, 2, 2), "VALID")
    h = jax.lax.conv_general_dilated(h, params["conv2_w"], (1, 1), "VALID",
                                     dimension_numbers=dn)
    h = jax.nn.relu(h + params["conv2_b"][None, :, None, None])
    h = jax.lax.reduce_window(h, -jnp.inf, jax.lax.max, (1, 1, 2, 2), (1, 1, 2, 2), "VALID")
    h = h.reshape(h.shape[0], -1)                    # matches torch x.view(-1, 400)
    h = jax.nn.relu(h @ params["fc1_w"].T + params["fc1_b"])
    h = jax.nn.relu(h @ params["fc2_w"].T + params["fc2_b"])
    return h @ params["fc3_w"].T + params["fc3_b"]


def init_params(key):
    """Deterministic synthetic parameters with the nn.Module shapes."""
    keys = jax.random.split(key, 10)

    def rnd(k, shape, fan_in):
        bound = 1.0 / jnp.sqrt(fan_in)
        return jax.random.uniform(k, shape, jnp.float32, -bound, bound)

    return {
        "conv1_w": rnd(keys[0], (6, 1, 5, 5), 1 * 5 * 5),
        "conv1_b": rnd(keys[1], (6,), 1 * 5 * 5),
        "conv2_w": rnd(keys[2], (16, 6, 5, 5), 6 * 5 * 5),
        "conv2_b": rnd(keys[3], (16,), 6 * 5 * 5),
        "fc1_w": rnd(keys[4], (120, 400), 400),
        "fc1_b": rnd(keys[5], (120,), 400),
        "fc2_w": rnd(keys[6], (84, 120), 120),
        "fc2_b": rnd(keys[7], (84,), 120),
        "fc3_w": rnd(keys[8], (10, 84), 84),
        "fc3_b": rnd(keys[9], (10,), 84),
    }


if __name__ == "__main__":
    key = jax.random.PRNGKey(0)
    k_params, k_x = jax.random.split(key)
    params = init_params(k_params)
    prepped = prepare_params(params)
    # Spatial size 32x32 (1 channel) is fixed by the architecture (fc1 = 16*5*5).
    x = jax.random.normal(k_x, (4, 1, 32, 32), dtype=jnp.float32)

    out = jax.block_until_ready(lenet_forward(prepped, x))
    assert out.shape == (4, 10) and out.dtype == jnp.float32

    ref = jax.block_until_ready(_reference_forward(params, x))
    err = float(jnp.max(jnp.abs(out - ref)))
    assert err < 5e-2, f"mismatch vs reference: max abs err = {err}"
    print("KERNEL_OK")
</pallas_src>

<mosaic_0001>
module attributes {stable_mosaic.version = 11 : i64} {
  func.func @_lenet_kernel(%arg0: i32, %arg1: memref<16x128xf32, #tpu.memory_space<vmem>>, %arg2: memref<256x672xbf16, #tpu.memory_space<vmem>>, %arg3: memref<1x672xf32, #tpu.memory_space<vmem>>, %arg4: memref<336x168xbf16, #tpu.memory_space<vmem>>, %arg5: memref<504x320xbf16, #tpu.memory_space<vmem>>, %arg6: memref<1x320xf32, #tpu.memory_space<vmem>>, %arg7: memref<160x80xbf16, #tpu.memory_space<vmem>>, %arg8: memref<400x120xbf16, #tpu.memory_space<vmem>>, %arg9: memref<1x120xf32, #tpu.memory_space<vmem>>, %arg10: memref<120x84xbf16, #tpu.memory_space<vmem>>, %arg11: memref<1x84xf32, #tpu.memory_space<vmem>>, %arg12: memref<84x128xbf16, #tpu.memory_space<vmem>>, %arg13: memref<1x128xf32, #tpu.memory_space<vmem>>, %arg14: memref<16x128xf32, #tpu.memory_space<vmem>>) attributes {dimension_semantics = [#tpu.dimension_semantics<parallel>], iteration_bounds = array<i64: 2>, scalar_prefetch = 0 : i64, scratch_operands = 0 : i64, tpu.core_type = #tpu.core_type<tc>, window_params = [{transform_indices = @transform_0, window_bounds = array<i64: 16, 128>}, {pipeline_mode = #tpu.pipeline_mode<synchronous>, transform_indices = @transform_1, window_bounds = array<i64: 256, 672>}, {pipeline_mode = #tpu.pipeline_mode<synchronous>, transform_indices = @transform_2, window_bounds = array<i64: 1, 672>}, {pipeline_mode = #tpu.pipeline_mode<synchronous>, transform_indices = @transform_3, window_bounds = array<i64: 336, 168>}, {pipeline_mode = #tpu.pipeline_mode<synchronous>, transform_indices = @transform_4, window_bounds = array<i64: 504, 320>}, {pipeline_mode = #tpu.pipeline_mode<synchronous>, transform_indices = @transform_5, window_bounds = array<i64: 1, 320>}, {pipeline_mode = #tpu.pipeline_mode<synchronous>, transform_indices = @transform_6, window_bounds = array<i64: 160, 80>}, {pipeline_mode = #tpu.pipeline_mode<synchronous>, transform_indices = @transform_7, window_bounds = array<i64: 400, 120>}, {pipeline_mode = #tpu.pipeline_mode<synchronous>, transform_indices = @transform_8, window_bounds = array<i64: 1, 120>}, {pipeline_mode = #tpu.pipeline_mode<synchronous>, transform_indices = @transform_9, window_bounds = array<i64: 120, 84>}, {pipeline_mode = #tpu.pipeline_mode<synchronous>, transform_indices = @transform_10, window_bounds = array<i64: 1, 84>}, {pipeline_mode = #tpu.pipeline_mode<synchronous>, transform_indices = @transform_11, window_bounds = array<i64: 84, 128>}, {pipeline_mode = #tpu.pipeline_mode<synchronous>, transform_indices = @transform_12, window_bounds = array<i64: 1, 128>}, {transform_indices = @transform_13, window_bounds = array<i64: 16, 128>}]} {
    %c0 = arith.constant 0 : index
    %c0_0 = arith.constant 0 : index
    %0 = vector.load %arg1[%c0, %c0_0] : memref<16x128xf32, #tpu.memory_space<vmem>>, vector<16x128xf32>
    %1 = vector.extract_strided_slice %0 {offsets = [1, 0], sizes = [15, 128], strides = [1, 1]} : vector<16x128xf32> to vector<15x128xf32>
    %2 = vector.extract_strided_slice %0 {offsets = [0, 0], sizes = [1, 128], strides = [1, 1]} : vector<16x128xf32> to vector<1x128xf32>
    %3 = tpu.concatenate %1, %2 in 0 : vector<15x128xf32>, vector<1x128xf32> -> vector<16x128xf32>
    %4 = tpu.concatenate %0, %3 in 1 : vector<16x128xf32>, vector<16x128xf32> -> vector<16x256xf32>
    %5 = arith.truncf %4 : vector<16x256xf32> to vector<16x256xbf16>
    %c0_1 = arith.constant 0 : index
    %c0_2 = arith.constant 0 : index
    %6 = vector.load %arg2[%c0_1, %c0_2] : memref<256x672xbf16, #tpu.memory_space<vmem>>, vector<256x672xbf16>
    %cst = arith.constant dense<0.000000e+00> : vector<16x672xf32>
    %7 = tpu.matmul %5, %6, %cst {dimension_numbers = #tpu.dot_dimension_numbers<[1], [0], [0], [1], [0, 0, 1, 1], [], []>} : vector<16x256xbf16>, vector<256x672xbf16>, vector<16x672xf32> -> vector<16x672xf32>
    %c0_3 = arith.constant 0 : index
    %c0_4 = arith.constant 0 : index
    %8 = vector.load %arg3[%c0_3, %c0_4] : memref<1x672xf32, #tpu.memory_space<vmem>>, vector<1x672xf32>
    %9 = vector.broadcast %8 : vector<1x672xf32> to vector<16x672xf32>
    %10 = arith.addf %7, %9 : vector<16x672xf32>
    %cst_5 = arith.constant 0.000000e+00 : f32
    %11 = vector.broadcast %cst_5 : f32 to vector<16x672xf32>
    %12 = arith.maximumf %10, %11 : vector<16x672xf32>
    %13 = vector.extract_strided_slice %12 {offsets = [0, 0], sizes = [16, 336], strides = [1, 1]} : vector<16x672xf32> to vector<16x336xf32>
    %14 = vector.extract_strided_slice %12 {offsets = [0, 336], sizes = [16, 336], strides = [1, 1]} : vector<16x672xf32> to vector<16x336xf32>
    %15 = arith.maximumf %13, %14 : vector<16x336xf32>
    %16 = vector.extract_strided_slice %15 {offsets = [0, 1], sizes = [16, 335], strides = [1, 1]} : vector<16x336xf32> to vector<16x335xf32>
    %17 = vector.extract_strided_slice %15 {offsets = [0, 0], sizes = [16, 1], strides = [1, 1]} : vector<16x336xf32> to vector<16x1xf32>
    %18 = tpu.concatenate %16, %17 in 1 : vector<16x335xf32>, vector<16x1xf32> -> vector<16x336xf32>
    %19 = arith.maximumf %15, %18 : vector<16x336xf32>
    %20 = arith.truncf %19 : vector<16x336xf32> to vector<16x336xbf16>
    %c0_6 = arith.constant 0 : index
    %c0_7 = arith.constant 0 : index
    %21 = vector.load %arg4[%c0_6, %c0_7] : memref<336x168xbf16, #tpu.memory_space<vmem>>, vector<336x168xbf16>
    %cst_8 = arith.constant dense<0.000000e+00> : vector<16x168xf32>
    %22 = tpu.matmul %20, %21, %cst_8 {dimension_numbers = #tpu.dot_dimension_numbers<[1], [0], [0], [1], [0, 0, 1, 1], [], []>} : vector<16x336xbf16>, vector<336x168xbf16>, vector<16x168xf32> -> vector<16x168xf32>
    %23 = vector.extract_strided_slice %22 {offsets = [1, 0], sizes = [15, 168], strides = [1, 1]} : vector<16x168xf32> to vector<15x168xf32>
    %24 = vector.extract_strided_slice %22 {offsets = [0, 0], sizes = [1, 168], strides = [1, 1]} : vector<16x168xf32> to vector<1x168xf32>
    %25 = tpu.concatenate %23, %24 in 0 : vector<15x168xf32>, vector<1x168xf32> -> vector<16x168xf32>
    %26 = vector.extract_strided_slice %22 {offsets = [2, 0], sizes = [14, 168], strides = [1, 1]} : vector<16x168xf32> to vector<14x168xf32>
    %27 = vector.extract_strided_slice %22 {offsets = [0, 0], sizes = [2, 168], strides = [1, 1]} : vector<16x168xf32> to vector<2x168xf32>
    %28 = tpu.concatenate %26, %27 in 0 : vector<14x168xf32>, vector<2x168xf32> -> vector<16x168xf32>
    %29 = tpu.concatenate %22, %25, %28 in 1 : vector<16x168xf32>, vector<16x168xf32>, vector<16x168xf32> -> vector<16x504xf32>
    %30 = arith.truncf %29 : vector<16x504xf32> to vector<16x504xbf16>
    %c0_9 = arith.constant 0 : index
    %c0_10 = arith.constant 0 : index
    %31 = vector.load %arg5[%c0_9, %c0_10] : memref<504x320xbf16, #tpu.memory_space<vmem>>, vector<504x320xbf16>
    %cst_11 = arith.constant dense<0.000000e+00> : vector<16x320xf32>
    %32 = tpu.matmul %30, %31, %cst_11 {dimension_numbers = #tpu.dot_dimension_numbers<[1], [0], [0], [1], [0, 0, 1, 1], [], []>} : vector<16x504xbf16>, vector<504x320xbf16>, vector<16x320xf32> -> vector<16x320xf32>
    %c0_12 = arith.constant 0 : index
    %c0_13 = arith.constant 0 : index
    %33 = vector.load %arg6[%c0_12, %c0_13] : memref<1x320xf32, #tpu.memory_space<vmem>>, vector<1x320xf32>
    %34 = vector.broadcast %33 : vector<1x320xf32> to vector<16x320xf32>
    %35 = arith.addf %32, %34 : vector<16x320xf32>
    %cst_14 = arith.constant 0.000000e+00 : f32
    %36 = vector.broadcast %cst_14 : f32 to vector<16x320xf32>
    %37 = arith.maximumf %35, %36 : vector<16x320xf32>
    %38 = vector.extract_strided_slice %37 {offsets = [0, 0], sizes = [16, 160], strides = [1, 1]} : vector<16x320xf32> to vector<16x160xf32>
    %39 = vector.extract_strided_slice %37 {offsets = [0, 160], sizes = [16, 160], strides = [1, 1]} : vector<16x320xf32> to vector<16x160xf32>
    %40 = arith.maximumf %38, %39 : vector<16x160xf32>
    %41 = vector.extract_strided_slice %40 {offsets = [0, 1], sizes = [16, 159], strides = [1, 1]} : vector<16x160xf32> to vector<16x159xf32>
    %42 = vector.extract_strided_slice %40 {offsets = [0, 0], sizes = [16, 1], strides = [1, 1]} : vector<16x160xf32> to vector<16x1xf32>
    %43 = tpu.concatenate %41, %42 in 1 : vector<16x159xf32>, vector<16x1xf32> -> vector<16x160xf32>
    %44 = arith.maximumf %40, %43 : vector<16x160xf32>
    %45 = arith.truncf %44 : vector<16x160xf32> to vector<16x160xbf16>
    %c0_15 = arith.constant 0 : index
    %c0_16 = arith.constant 0 : index
    %46 = vector.load %arg7[%c0_15, %c0_16] : memref<160x80xbf16, #tpu.memory_space<vmem>>, vector<160x80xbf16>
    %cst_17 = arith.constant dense<0.000000e+00> : vector<16x80xf32>
    %47 = tpu.matmul %45, %46, %cst_17 {dimension_numbers = #tpu.dot_dimension_numbers<[1], [0], [0], [1], [0, 0, 1, 1], [], []>} : vector<16x160xbf16>, vector<160x80xbf16>, vector<16x80xf32> -> vector<16x80xf32>
    %48 = vector.extract_strided_slice %47 {offsets = [1, 0], sizes = [15, 80], strides = [1, 1]} : vector<16x80xf32> to vector<15x80xf32>
    %49 = vector.extract_strided_slice %47 {offsets = [0, 0], sizes = [1, 80], strides = [1, 1]} : vector<16x80xf32> to vector<1x80xf32>
    %50 = tpu.concatenate %48, %49 in 0 : vector<15x80xf32>, vector<1x80xf32> -> vector<16x80xf32>
    %51 = vector.extract_strided_slice %47 {offsets = [2, 0], sizes = [14, 80], strides = [1, 1]} : vector<16x80xf32> to vector<14x80xf32>
    %52 = vector.extract_strided_slice %47 {offsets = [0, 0], sizes = [2, 80], strides = [1, 1]} : vector<16x80xf32> to vector<2x80xf32>
    %53 = tpu.concatenate %51, %52 in 0 : vector<14x80xf32>, vector<2x80xf32> -> vector<16x80xf32>
    %54 = vector.extract_strided_slice %47 {offsets = [3, 0], sizes = [13, 80], strides = [1, 1]} : vector<16x80xf32> to vector<13x80xf32>
    %55 = vector.extract_strided_slice %47 {offsets = [0, 0], sizes = [3, 80], strides = [1, 1]} : vector<16x80xf32> to vector<3x80xf32>
    %56 = tpu.concatenate %54, %55 in 0 : vector<13x80xf32>, vector<3x80xf32> -> vector<16x80xf32>
    %57 = vector.extract_strided_slice %47 {offsets = [4, 0], sizes = [12, 80], strides = [1, 1]} : vector<16x80xf32> to vector<12x80xf32>
    %58 = vector.extract_strided_slice %47 {offsets = [0, 0], sizes = [4, 80], strides = [1, 1]} : vector<16x80xf32> to vector<4x80xf32>
    %59 = tpu.concatenate %57, %58 in 0 : vector<12x80xf32>, vector<4x80xf32> -> vector<16x80xf32>
    %60 = tpu.concatenate %47, %50, %53, %56, %59 in 1 : vector<16x80xf32>, vector<16x80xf32>, vector<16x80xf32>, vector<16x80xf32>, vector<16x80xf32> -> vector<16x400xf32>
    %61 = arith.truncf %60 : vector<16x400xf32> to vector<16x400xbf16>
    %c0_18 = arith.constant 0 : index
    %c0_19 = arith.constant 0 : index
    %62 = vector.load %arg8[%c0_18, %c0_19] : memref<400x120xbf16, #tpu.memory_space<vmem>>, vector<400x120xbf16>
    %cst_20 = arith.constant dense<0.000000e+00> : vector<16x120xf32>
    %63 = tpu.matmul %61, %62, %cst_20 {dimension_numbers = #tpu.dot_dimension_numbers<[1], [0], [0], [1], [0, 0, 1, 1], [], []>} : vector<16x400xbf16>, vector<400x120xbf16>, vector<16x120xf32> -> vector<16x120xf32>
    %c0_21 = arith.constant 0 : index
    %c0_22 = arith.constant 0 : index
    %64 = vector.load %arg9[%c0_21, %c0_22] : memref<1x120xf32, #tpu.memory_space<vmem>>, vector<1x120xf32>
    %65 = vector.broadcast %64 : vector<1x120xf32> to vector<16x120xf32>
    %66 = arith.addf %63, %65 : vector<16x120xf32>
    %cst_23 = arith.constant 0.000000e+00 : f32
    %67 = vector.broadcast %cst_23 : f32 to vector<16x120xf32>
    %68 = arith.maximumf %66, %67 : vector<16x120xf32>
    %69 = arith.truncf %68 : vector<16x120xf32> to vector<16x120xbf16>
    %c0_24 = arith.constant 0 : index
    %c0_25 = arith.constant 0 : index
    %70 = vector.load %arg10[%c0_24, %c0_25] : memref<120x84xbf16, #tpu.memory_space<vmem>>, vector<120x84xbf16>
    %cst_26 = arith.constant dense<0.000000e+00> : vector<16x84xf32>
    %71 = tpu.matmul %69, %70, %cst_26 {dimension_numbers = #tpu.dot_dimension_numbers<[1], [0], [0], [1], [0, 0, 1, 1], [], []>} : vector<16x120xbf16>, vector<120x84xbf16>, vector<16x84xf32> -> vector<16x84xf32>
    %c0_27 = arith.constant 0 : index
    %c0_28 = arith.constant 0 : index
    %72 = vector.load %arg11[%c0_27, %c0_28] : memref<1x84xf32, #tpu.memory_space<vmem>>, vector<1x84xf32>
    %73 = vector.broadcast %72 : vector<1x84xf32> to vector<16x84xf32>
    %74 = arith.addf %71, %73 : vector<16x84xf32>
    %cst_29 = arith.constant 0.000000e+00 : f32
    %75 = vector.broadcast %cst_29 : f32 to vector<16x84xf32>
    %76 = arith.maximumf %74, %75 : vector<16x84xf32>
    %77 = arith.truncf %76 : vector<16x84xf32> to vector<16x84xbf16>
    %c0_30 = arith.constant 0 : index
    %c0_31 = arith.constant 0 : index
    %78 = vector.load %arg12[%c0_30, %c0_31] : memref<84x128xbf16, #tpu.memory_space<vmem>>, vector<84x128xbf16>
    %cst_32 = arith.constant dense<0.000000e+00> : vector<16x128xf32>
    %79 = tpu.matmul %77, %78, %cst_32 {dimension_numbers = #tpu.dot_dimension_numbers<[1], [0], [0], [1], [0, 0, 1, 1], [], []>} : vector<16x84xbf16>, vector<84x128xbf16>, vector<16x128xf32> -> vector<16x128xf32>
    %c0_33 = arith.constant 0 : index
    %c0_34 = arith.constant 0 : index
    %80 = vector.load %arg13[%c0_33, %c0_34] : memref<1x128xf32, #tpu.memory_space<vmem>>, vector<1x128xf32>
    %81 = vector.broadcast %80 : vector<1x128xf32> to vector<16x128xf32>
    %82 = arith.addf %79, %81 : vector<16x128xf32>
    %c0_35 = arith.constant 0 : index
    %c0_36 = arith.constant 0 : index
    %83 = vector.load %arg14[%c0_35, %c0_36] : memref<16x128xf32, #tpu.memory_space<vmem>>, vector<16x128xf32>
    tpu.vector_store %arg14[%c0_35, %c0_36], %82 {strides = array<i32>} : memref<16x128xf32, #tpu.memory_space<vmem>>, vector<16x128xf32>,
    return
  }
  func.func @transform_0(%arg0: i32) -> (i32, i32) {
    %c0_i32 = arith.constant 0 : i32
    %c0_i32_0 = arith.constant 0 : i32
    return %arg0, %c0_i32 : i32, i32
  }
  func.func @transform_1(%arg0: i32) -> (i32, i32) {
    %c0_i32 = arith.constant 0 : i32
    %c0_i32_0 = arith.constant 0 : i32
    %c0_i32_1 = arith.constant 0 : i32
    return %c0_i32, %c0_i32_0 : i32, i32
  }
  func.func @transform_2(%arg0: i32) -> (i32, i32) {
    %c0_i32 = arith.constant 0 : i32
    %c0_i32_0 = arith.constant 0 : i32
    %c0_i32_1 = arith.constant 0 : i32
    return %c0_i32, %c0_i32_0 : i32, i32
  }
  func.func @transform_3(%arg0: i32) -> (i32, i32) {
    %c0_i32 = arith.constant 0 : i32
    %c0_i32_0 = arith.constant 0 : i32
    %c0_i32_1 = arith.constant 0 : i32
    return %c0_i32, %c0_i32_0 : i32, i32
  }
  func.func @transform_4(%arg0: i32) -> (i32, i32) {
    %c0_i32 = arith.constant 0 : i32
    %c0_i32_0 = arith.constant 0 : i32
    %c0_i32_1 = arith.constant 0 : i32
    return %c0_i32, %c0_i32_0 : i32, i32
  }
  func.func @transform_5(%arg0: i32) -> (i32, i32) {
    %c0_i32 = arith.constant 0 : i32
    %c0_i32_0 = arith.constant 0 : i32
    %c0_i32_1 = arith.constant 0 : i32
    return %c0_i32, %c0_i32_0 : i32, i32
  }
  func.func @transform_6(%arg0: i32) -> (i32, i32) {
    %c0_i32 = arith.constant 0 : i32
    %c0_i32_0 = arith.constant 0 : i32
    %c0_i32_1 = arith.constant 0 : i32
    return %c0_i32, %c0_i32_0 : i32, i32
  }
  func.func @transform_7(%arg0: i32) -> (i32, i32) {
    %c0_i32 = arith.constant 0 : i32
    %c0_i32_0 = arith.constant 0 : i32
    %c0_i32_1 = arith.constant 0 : i32
    return %c0_i32, %c0_i32_0 : i32, i32
  }
  func.func @transform_8(%arg0: i32) -> (i32, i32) {
    %c0_i32 = arith.constant 0 : i32
    %c0_i32_0 = arith.constant 0 : i32
    %c0_i32_1 = arith.constant 0 : i32
    return %c0_i32, %c0_i32_0 : i32, i32
  }
  func.func @transform_9(%arg0: i32) -> (i32, i32) {
    %c0_i32 = arith.constant 0 : i32
    %c0_i32_0 = arith.constant 0 : i32
    %c0_i32_1 = arith.constant 0 : i32
    return %c0_i32, %c0_i32_0 : i32, i32
  }
  func.func @transform_10(%arg0: i32) -> (i32, i32) {
    %c0_i32 = arith.constant 0 : i32
    %c0_i32_0 = arith.constant 0 : i32
    %c0_i32_1 = arith.constant 0 : i32
    return %c0_i32, %c0_i32_0 : i32, i32
  }
  func.func @transform_11(%arg0: i32) -> (i32, i32) {
    %c0_i32 = arith.constant 0 : i32
    %c0_i32_0 = arith.constant 0 : i32
    %c0_i32_1 = arith.constant 0 : i32
    return %c0_i32, %c0_i32_0 : i32, i32
  }
  func.func @transform_12(%arg0: i32) -> (i32, i32) {
    %c0_i32 = arith.constant 0 : i32
    %c0_i32_0 = arith.constant 0 : i32
    %c0_i32_1 = arith.constant 0 : i32
    return %c0_i32, %c0_i32_0 : i32, i32
  }
  func.func @transform_13(%arg0: i32) -> (i32, i32) {
    %c0_i32 = arith.constant 0 : i32
    %c0_i32_0 = arith.constant 0 : i32
    return %arg0, %c0_i32 : i32, i32
  }
}

</mosaic_0001>

<bundles_post_ra>
// kernel: lenet_forward.1
= control target key start
LH: loop header
LB: loop body
LE: loop exit
PB: predicated region body
PF: predicated region fallthrough
CT: control target
= control target key end

     0   :  { %s4390_s25 = smov 0   ;;  %s5458_s0 = inlined_call_operand.vmem [shape: f32[32,128], index: 0, kind: input, shape index: {}]   ;;  %s5459_s1 = inlined_call_operand.vmem [shape: bf16[256,672], index: 1, kind: input, shape index: {}]   ;;  %s5460_s2 = inlined_call_operand.vmem [shape: f32[1,672], index: 2, kind: input, shape index: {}]   ;;  %s5461_s3 = inlined_call_operand.vmem [shape: bf16[336,168], index: 3, kind: input, shape index: {}]   ;;  %s5462_s4 = inlined_call_operand.vmem [shape: bf16[504,320], index: 4, kind: input, shape index: {}]   ;;  %s5463_s5 = inlined_call_operand.vmem [shape: f32[1,320], index: 5, kind: input, shape index: {}]   ;;  %s5464_s6 = inlined_call_operand.vmem [shape: bf16[160,80], index: 6, kind: input, shape index: {}]   ;;  %s5465_s7 = inlined_call_operand.vmem [shape: bf16[400,120], index: 7, kind: input, shape index: {}]   ;;  %s5466_s8 = inlined_call_operand.vmem [shape: f32[1,120], index: 8, kind: input, shape index: {}]   ;;  %s5467_s9 = inlined_call_operand.vmem [shape: bf16[120,84], index: 9, kind: input, shape index: {}]   ;;  %s5468_s10 = inlined_call_operand.vmem [shape: f32[1,84], index: 10, kind: input, shape index: {}]   ;;  %s5469_s11 = inlined_call_operand.vmem [shape: bf16[84,128], index: 11, kind: input, shape index: {}]   ;;  %s5470_s12 = inlined_call_operand.vmem [shape: f32[1,128], index: 12, kind: input, shape index: {}]   ;;  %s5471_s13 = inlined_call_operand.vmem [shape: f32[32,128], index: 13, kind: output, shape index: {}]  }
   0x1 LB: > { %s3366_s26 = sadd.s32 4294967295, %s4305_s25   ;;  %p3370_p0 = scmp.ge.s32.totalorder %s4305_s25, 1  ;;  %s4305_s25 = sphi %s4390_s25, %s23_s25  }
   0x2   : > { %p388_p1 = scmp.lt.s32.totalorder %s4305_s25, 3 }
   0x4   : > { %p389_p2 = pnand %p3370_p0, %p388_p1 }
   0x5   : > { %s3371_s20 = sshll.u32 (!%p389_p2), %s3366_s26, 1  ;;  %s4307_s28 = smov (!%p389_p2), 48  }
   0x6   : > { %392 = sbr.rel (%p389_p2) target bundleno = 2350 (0x92e), region = 72  ;;  %p433_p3 = scmp.lt.s32.totalorder (!%p389_p2), %s3371_s20, 3 }
   0x7   : > { %s4310_s26 = smov (!%p389_p2), 79   ;;  %s4311_s14 = smov (!%p389_p2), 40  }
   0x8   : > { %s4312_s15 = smov (!%p389_p2), 80   ;;  %s4313_s18 = smov (!%p389_p2), 96  }
   0xb   : > { %v3916_v0 = vld [vmem:[%s5459_s1 + $0x154] ss:$24 sps:$4 sm:$0xff]   ;;  %v3918_v1 = vld [vmem:[%s5459_s1 + $0x150] ss:$24 sps:$4 sm:$0xff]   ;;  %v3919_v2 = vld [vmem:[%s5459_s1 + $0x124] ss:$24 sps:$4 sm:$0xff]  }
   0xc   : > { %1067 = vmatprep.subr.bf16.mxu0 %v3916_v0  ;;  %v3921_v3 = vld [vmem:[%s5459_s1 + $0x120] ss:$24 sps:$4 sm:$0xff]   ;;  %v3922_v4 = vld [vmem:[%s5459_s1 + $0xf4] ss:$24 sps:$4 sm:$0xff]   ;;  %v3924_v5 = vld [vmem:[%s5459_s1 + $0xf0] ss:$24 sps:$4 sm:$0xff]  }
   0xd   : > { %1068 = vmatpush1.bf16.msra.mxu0 %v3918_v1  ;;  %v3925_v6 = vld [vmem:[%s5459_s1 + $0xc4] ss:$24 sps:$4 sm:$0xff]   ;;  %v3927_v7 = vld [vmem:[%s5459_s1 + $0xc0] ss:$24 sps:$4 sm:$0xff]   ;;  %v3928_v8 = vld [vmem:[%s5459_s1 + $0x94] ss:$24 sps:$4 sm:$0xff]  }
   0xe   : > { %1069 = vmatprep.subr.bf16.mxu0 %v3919_v2  ;;  %s5473_s20 = smov (!%p433_p3, %s3371_s20), 3  ;;  %v3930_v9 = vld [vmem:[%s5459_s1 + $0x90] ss:$24 sps:$4 sm:$0xff]   ;;  %v3931_v10 = vld [vmem:[%s5459_s1 + $0x64] ss:$24 sps:$4 sm:$0xff]   ;;  %vm449_vm0 = vcmask 1046528  }
   0xf   : > { %s3372_s17 = sshll.u32 %s5473_s20, 3  ;;  %v3933_v11 = vld [vmem:[%s5459_s1 + $0x60] ss:$24 sps:$4 sm:$0xff]   ;;  %v3934_v12 = vld [vmem:[%s5459_s1 + $0x34] ss:$24 sps:$4 sm:$0xff]   ;;  %vm1232_vm1 = vcmask 392192  }
  0x10   : > { %v3961_v13 = vld [vmem:[%s5459_s1 + $0x15c] ss:$24 sps:$4 sm:$0xff]   ;;  %s436_s29 = scalar_lea.vmem %s5458_s0, %s3372_s17  ;;  %v3963_v14 = vld [vmem:[%s5459_s1 + $0x158] ss:$24 sps:$4 sm:$0xff]   ;;  %v3967_v17 = vld [vmem:[%s5459_s1 + $0x12c] ss:$24 sps:$4 sm:$0xff]   ;;  %s442_s24 = scalar_lea.vmem %s5471_s13, %s3372_s17 }
  0x11   : > { %1070 = vmatpush1.bf16.msra.mxu0 %v3921_v3  ;;  %v3936_v15 = vld [vmem:[%s5459_s1 + $0x30] ss:$24 sps:$4 sm:$0xff]   ;;  %v3937_v16 = vld [vmem:[%s5459_s1 + $0x4] ss:$24 sps:$4 sm:$0xff]   ;;  %1110 = vmatprep.subr.bf16.mxu1 %v3961_v13  ;;  %v3939_v22 = vld [vmem:[%s5459_s1] ss:$24 sps:$4 sm:$0xff]  }
  0x12   : > { %1071 = vmatprep.subr.bf16.mxu0 %v3922_v4  ;;  %1111 = vmatpush1.bf16.msra.mxu1 %v3963_v14  ;;  %v4460_v18 = vld [vmem:[%s436_s29] sm:$0xff]  ;;  %v4462_v19 = vld [vmem:[%s436_s29 + $0x8] sm:$0xff]  ;;  %v3973_v24 = vld [vmem:[%s5459_s1 + $0xfc] ss:$24 sps:$4 sm:$0xff]   ;;  %s4309_s29 = smov 127   ;;  %vm1269_vm2 = vcmask 1039360  }
  0x13   : > { %v450_v20 = vrot.slane %v4460_v18, 1  ;;  %v3969_v21 = vld [vmem:[%s5459_s1 + $0x128] ss:$24 sps:$4 sm:$0xff]   ;;  %1112 = vmatprep.subr.bf16.mxu1 %v3967_v17  ;;  %v451_v23 = vrot.slane %v4462_v19, 1  ;;  %v3975_v27 = vld [vmem:[%s5459_s1 + $0xf8] ss:$24 sps:$4 sm:$0xff]   ;;  %v4588_v63 = vpack.c.bf16 %v4462_v19, %v4460_v18 }
  0x14   : > { %v3940_v28 = vld [vmem:[%s5459_s1 + $0x2d4] ss:$24 sps:$4 sm:$0xff]   ;;  %v3942_v31 = vld [vmem:[%s5459_s1 + $0x2d0] ss:$24 sps:$4 sm:$0xff]   ;;  %v3943_v33 = vld [vmem:[%s5459_s1 + $0x2a4] ss:$24 sps:$4 sm:$0xff]  }
  0x15   : > { %1072 = vmatpush1.bf16.msra.mxu0 %v3924_v5  ;;  %v452_v25 = vsel %vm449_vm0, %v450_v20, %v451_v23  ;;  %v456_v26 = vsel %vm449_vm0, %v451_v23, %v450_v20  ;;  %v3979_v30 = vld [vmem:[%s5459_s1 + $0xcc] ss:$24 sps:$4 sm:$0xff]   ;;  %v3981_v32 = vld [vmem:[%s5459_s1 + $0xc8] ss:$24 sps:$4 sm:$0xff]   ;;  %v3985_v34 = vld [vmem:[%s5459_s1 + $0x9c] ss:$24 sps:$4 sm:$0xff]  }
  0x16   : > { %1073 = vmatprep.subr.bf16.mxu0 %v3925_v6  ;;  %1113 = vmatpush1.bf16.msra.mxu1 %v3969_v21  ;;  %v4483_v29 = vpack.c.bf16 %v456_v26, %v452_v25  ;;  %v3945_v35 = vld [vmem:[%s5459_s1 + $0x2a0] ss:$24 sps:$4 sm:$0xff]   ;;  %v3946_v37 = vld [vmem:[%s5459_s1 + $0x274] ss:$24 sps:$4 sm:$0xff]   ;;  %v3948_v39 = vld [vmem:[%s5459_s1 + $0x270] ss:$24 sps:$4 sm:$0xff]  }
  0x17   : > { %1114 = vmatprep.subr.bf16.mxu1 %v3973_v24  ;;  %v3987_v36 = vld [vmem:[%s5459_s1 + $0x98] ss:$24 sps:$4 sm:$0xff]   ;;  %v3991_v38 = vld [vmem:[%s5459_s1 + $0x6c] ss:$24 sps:$4 sm:$0xff]   ;;  %v3993_v40 = vld [vmem:[%s5459_s1 + $0x68] ss:$24 sps:$4 sm:$0xff]  }
  0x18   : > { %1099 = vmatprep.mubr.bf16.mxu0 %v4483_v29  ;;  %1142 = vmatprep.mubr.bf16.mxu1 %v4483_v29  ;;  %v3949_v41 = vld [vmem:[%s5459_s1 + $0x244] ss:$24 sps:$4 sm:$0xff]   ;;  %v3951_v43 = vld [vmem:[%s5459_s1 + $0x240] ss:$24 sps:$4 sm:$0xff]   ;;  %v3952_v45 = vld [vmem:[%s5459_s1 + $0x214] ss:$24 sps:$4 sm:$0xff]  }
  0x19   : > { %1074 = vmatpush1.bf16.msra.mxu0 %v3927_v7  ;;  %v3997_v42 = vld [vmem:[%s5459_s1 + $0x3c] ss:$24 sps:$4 sm:$0xff]   ;;  %v3999_v44 = vld [vmem:[%s5459_s1 + $0x38] ss:$24 sps:$4 sm:$0xff]   ;;  %v4003_v46 = vld [vmem:[%s5459_s1 + $0xc] ss:$24 sps:$4 sm:$0xff]  }
  0x1a   : > { %1075 = vmatprep.subr.bf16.mxu0 %v3928_v8  ;;  %1115 = vmatpush1.bf16.msra.mxu1 %v3975_v27  ;;  %v3954_v47 = vld [vmem:[%s5459_s1 + $0x210] ss:$24 sps:$4 sm:$0xff]   ;;  %v3955_v49 = vld [vmem:[%s5459_s1 + $0x1e4] ss:$24 sps:$4 sm:$0xff]   ;;  %v3957_v51 = vld [vmem:[%s5459_s1 + $0x1e0] ss:$24 sps:$4 sm:$0xff]  }
  0x1b   : > { %1116 = vmatprep.subr.bf16.mxu1 %v3979_v30  ;;  %v4005_v48 = vld [vmem:[%s5459_s1 + $0x8] ss:$24 sps:$4 sm:$0xff]   ;;  %v4009_v50 = vld [vmem:[%s5459_s1 + $0x2dc] ss:$24 sps:$4 sm:$0xff]   ;;  %v4011_v52 = vld [vmem:[%s5459_s1 + $0x2d8] ss:$24 sps:$4 sm:$0xff]  }
  0x1c   : > { %v3958_v53 = vld [vmem:[%s5459_s1 + $0x1b4] ss:$24 sps:$4 sm:$0xff]   ;;  %v3960_v55 = vld [vmem:[%s5459_s1 + $0x1b0] ss:$24 sps:$4 sm:$0xff]   ;;  %v3964_v57 = vld [vmem:[%s5459_s1 + $0x184] ss:$24 sps:$4 sm:$0xff]  }
  0x1d   : > { %1076 = vmatpush1.bf16.msra.mxu0 %v3930_v9  ;;  %v4015_v54 = vld [vmem:[%s5459_s1 + $0x2ac] ss:$24 sps:$4 sm:$0xff]   ;;  %v4017_v56 = vld [vmem:[%s5459_s1 + $0x2a8] ss:$24 sps:$4 sm:$0xff]   ;;  %v4021_v58 = vld [vmem:[%s5459_s1 + $0x27c] ss:$24 sps:$4 sm:$0xff]  }
  0x1e   : > { %1077 = vmatprep.subr.bf16.mxu0 %v3931_v10  ;;  %1117 = vmatpush1.bf16.msra.mxu1 %v3981_v32  ;;  %v3966_v59 = vld [vmem:[%s5459_s1 + $0x180] ss:$24 sps:$4 sm:$0xff]   ;;  %v3972_v61 = vld [vmem:[%s5459_s1 + $0x164] ss:$24 sps:$4 sm:$0xff]   ;;  %v3978_v2 = vld [vmem:[%s5459_s1 + $0x134] ss:$24 sps:$4 sm:$0xff]  }
  0x1f   : > { %1118 = vmatprep.subr.bf16.mxu1 %v3985_v34  ;;  %v4023_v60 = vld [vmem:[%s5459_s1 + $0x278] ss:$24 sps:$4 sm:$0xff]   ;;  %v4027_v62 = vld [vmem:[%s5459_s1 + $0x24c] ss:$24 sps:$4 sm:$0xff]   ;;  %v4029_v1 = vld [vmem:[%s5459_s1 + $0x248] ss:$24 sps:$4 sm:$0xff]  }
  0x20   : > { %v3970_v0 = vld [vmem:[%s5459_s1 + $0x160] ss:$24 sps:$4 sm:$0xff]   ;;  %v4033_v3 = vld [vmem:[%s5459_s1 + $0x21c] ss:$24 sps:$4 sm:$0xff]   ;;  %v3976_v4 = vld [vmem:[%s5459_s1 + $0x130] ss:$24 sps:$4 sm:$0xff]  }
  0x21   : > { %1078 = vmatpush1.bf16.msra.mxu0 %v3933_v11  ;;  %v4035_v5 = vld [vmem:[%s5459_s1 + $0x218] ss:$24 sps:$4 sm:$0xff]   ;;  %v3984_v6 = vld [vmem:[%s5459_s1 + $0x104] ss:$24 sps:$4 sm:$0xff]   ;;  %v4041_v9 = vld [vmem:[%s5459_s1 + $0x1e8] ss:$24 sps:$4 sm:$0xff]  }
  0x22   : > { %1079 = vmatprep.subr.bf16.mxu0 %v3934_v12  ;;  %1119 = vmatpush1.bf16.msra.mxu1 %v3987_v36  ;;  %v4039_v7 = vld [vmem:[%s5459_s1 + $0x1ec] ss:$24 sps:$4 sm:$0xff]   ;;  %v3982_v8 = vld [vmem:[%s5459_s1 + $0x100] ss:$24 sps:$4 sm:$0xff]   ;;  %v4045_v11 = vld [vmem:[%s5459_s1 + $0x1bc] ss:$24 sps:$4 sm:$0xff]  }
  0x23   : > { %1120 = vmatprep.subr.bf16.mxu1 %v3991_v38  ;;  %v3990_v10 = vld [vmem:[%s5459_s1 + $0xd4] ss:$24 sps:$4 sm:$0xff]   ;;  %v3988_v12 = vld [vmem:[%s5459_s1 + $0xd0] ss:$24 sps:$4 sm:$0xff]   ;;  %v3996_v14 = vld [vmem:[%s5459_s1 + $0xa4] ss:$24 sps:$4 sm:$0xff]  }
  0x24   : > { %v4047_v13 = vld [vmem:[%s5459_s1 + $0x1b8] ss:$24 sps:$4 sm:$0xff]   ;;  %v4053_v17 = vld [vmem:[%s5459_s1 + $0x188] ss:$24 sps:$4 sm:$0xff]   ;;  %v4002_v18 = vld [vmem:[%s5459_s1 + $0x74] ss:$24 sps:$4 sm:$0xff]  }
  0x25   : > { %1080 = vmatpush1.bf16.msra.mxu0 %v3936_v15  ;;  %v4051_v15 = vld [vmem:[%s5459_s1 + $0x18c] ss:$24 sps:$4 sm:$0xff]   ;;  %v4000_v19 = vld [vmem:[%s5459_s1 + $0x70] ss:$24 sps:$4 sm:$0xff]   ;;  %v4006_v21 = vld [vmem:[%s5459_s1 + $0x40] ss:$24 sps:$4 sm:$0xff]  }
  0x26   : > { %1081 = vmatprep.subr.bf16.mxu0 %v3937_v16  ;;  %1121 = vmatpush1.bf16.msra.mxu1 %v3993_v40  ;;  %v3994_v16 = vld [vmem:[%s5459_s1 + $0xa0] ss:$24 sps:$4 sm:$0xff]   ;;  %v4008_v20 = vld [vmem:[%s5459_s1 + $0x44] ss:$24 sps:$4 sm:$0xff]   ;;  %v4012_v23 = vld [vmem:[%s5459_s1 + $0x10] ss:$24 sps:$4 sm:$0xff]   ;;  %v557_v40 = vlaneseq }
  0x27   : > { %1122 = vmatprep.subr.bf16.mxu1 %v3997_v42  ;;  %v4020_v24 = vld [vmem:[%s5459_s1 + $0x2e4] ss:$24 sps:$4 sm:$0xff]   ;;  %v4018_v25 = vld [vmem:[%s5459_s1 + $0x2e0] ss:$24 sps:$4 sm:$0xff]   ;;  %v4026_v26 = vld [vmem:[%s5459_s1 + $0x2b4] ss:$24 sps:$4 sm:$0xff]  }
  0x28   : > { %v4024_v27 = vld [vmem:[%s5459_s1 + $0x2b0] ss:$24 sps:$4 sm:$0xff]   ;;  %v4038_v30 = vld [vmem:[%s5459_s1 + $0x254] ss:$24 sps:$4 sm:$0xff]   ;;  %v4044_v32 = vld [vmem:[%s5459_s1 + $0x224] ss:$24 sps:$4 sm:$0xff]  }
  0x29   : > { %1082 = vmatpush1.bf16.msra.mxu0 %v3939_v22  ;;  %v4014_v22 = vld [vmem:[%s5459_s1 + $0x14] ss:$24 sps:$4 sm:$0xff]   ;;  %v4056_v36 = vld [vmem:[%s5459_s1 + $0x1c4] ss:$24 sps:$4 sm:$0xff]   ;;  %v4716_v42 = vshrl.u32 %v557_v40, 7  ;;  %vm1286_vm3 = vcmask 646144  }
  0x2a   : > { %1083 = vmatprep.subr.bf16.mxu0 %v3940_v28  ;;  %1123 = vmatpush1.bf16.msra.mxu1 %v3999_v44  ;;  %v4032_v28 = vld [vmem:[%s5459_s1 + $0x284] ss:$24 sps:$4 sm:$0xff]   ;;  %v4050_v34 = vld [vmem:[%s5459_s1 + $0x1f4] ss:$24 sps:$4 sm:$0xff]   ;;  %v4084_v40 = vld [vmem:[%s5461_s3 + $0xf0] ss:$8 sps:$4 sm:$0xff]  }
  0x2b   : > { %1124 = vmatprep.subr.bf16.mxu1 %v4003_v46  ;;  %v4059_v38 = vld [vmem:[%s5459_s1 + $0x194] ss:$24 sps:$4 sm:$0xff]   ;;  %v571_v44 = vsub.s32 3, %v4716_v42  ;;  %v4724_v46 = vld [vmem:[%s5460_s2] sm:$0x3f]  ;;  %vm1550_vm4 = vcmask 654336  }
  0x2c   : > { %vm2361_vm5 = vcmask 1043456   ;;  %vm1656_vm6 = vcmask 1045504   ;;  %vm1679_vm7 = vcmask 326656   ;;  %vm2357_vm8 = vcmask 982016  }
  0x2d   : > { %1084 = vmatpush2.bf16.msra.mxu0 %v3942_v31  ;;  %v4036_v31 = vld [vmem:[%s5459_s1 + $0x250] ss:$24 sps:$4 sm:$0xff]   ;;  %vm2557_vm9 = vcmask 785408   ;;  %vm2592_vm10 = vcmask 252928   ;;  %vm2681_vm11 = vcmask 261120   ;;  %vm2740_vm12 = vcmask 1044480  }
  0x2e   : > { %1085 = vmatprep.subr.bf16.mxu0 %v3943_v33  ;;  %1125 = vmatpush1.bf16.msra.mxu1 %v4005_v48  ;;  %v4042_v33 = vld [vmem:[%s5459_s1 + $0x220] ss:$24 sps:$4 sm:$0xff]   ;;  %v572_v48 = vrot.slane %v4724_v46, %v571_v44  ;;  %vm2788_vm13 = vcmask 523264   ;;  %vm3002_vm14 = vcmask 130048   ;;  %vm2785_vm15 = vcmask 916480  }
  0x2f   : > { %1126 = vmatprep.subr.bf16.mxu1 %v4009_v50  ;;  %v4087_v44 = vld [vmem:[%s5461_s3 + $0xe0] ss:$8 sps:$4 sm:$0xff]  }
  0x31   : > { %1086 = vmatpush2.bf16.msra.mxu0 %v3945_v35  ;;  %v4048_v35 = vld [vmem:[%s5459_s1 + $0x1f0] ss:$24 sps:$4 sm:$0xff]  }
  0x32   : > { %1087 = vmatprep.subr.bf16.mxu0 %v3946_v37  ;;  %1127 = vmatpush2.bf16.msra.mxu1 %v4011_v52  ;;  %v4054_v37 = vld [vmem:[%s5459_s1 + $0x1c0] ss:$24 sps:$4 sm:$0xff]  }
  0x33   : > { %1128 = vmatprep.subr.bf16.mxu1 %v4015_v54 }
  0x35   : > { %1088 = vmatpush2.bf16.msra.mxu0 %v3948_v39  ;;  %v4057_v39 = vld [vmem:[%s5459_s1 + $0x190] ss:$24 sps:$4 sm:$0xff]  }
  0x36   : > { %1089 = vmatprep.subr.bf16.mxu0 %v3949_v41  ;;  %1129 = vmatpush2.bf16.msra.mxu1 %v4017_v56  ;;  %v567_v56 = vsub.s32 2, %v4716_v42 }
  0x37   : > { %1130 = vmatprep.subr.bf16.mxu1 %v4021_v58 }
  0x39   : > { %1090 = vmatpush2.bf16.msra.mxu0 %v3951_v43 }
  0x3a   : > { %1091 = vmatprep.subr.bf16.mxu0 %v3952_v45  ;;  %1131 = vmatpush2.bf16.msra.mxu1 %v4023_v60 }
  0x3b   : > { %1132 = vmatprep.subr.bf16.mxu1 %v4027_v62 }
  0x3d   : > { %1092 = vmatpush2.bf16.msra.mxu0 %v3954_v47 }
  0x3e   : > { %1093 = vmatprep.subr.bf16.mxu0 %v3955_v49  ;;  %1133 = vmatpush2.bf16.msra.mxu1 %v4029_v1  ;;  %v575_v49 = vsub.s32 4, %v4716_v42 }
  0x3f   : > { %1134 = vmatprep.subr.bf16.mxu1 %v4033_v3 }
  0x40   : > { %v576_v54 = vrot.slane %v4724_v46, %v575_v49  ;;  %v4095_v49 = vld [vmem:[%s5461_s3 + $0xc4] ss:$8 sps:$4 sm:$0xff]  }
  0x41   : > { %1094 = vmatpush2.bf16.msra.mxu0 %v3957_v51  ;;  %v579_v51 = vsub.s32 5, %v4716_v42 }
  0x42   : > { %1095 = vmatprep.subr.bf16.mxu0 %v3958_v53  ;;  %1135 = vmatpush2.bf16.msra.mxu1 %v4035_v5 }
  0x43   : > { %1136 = vmatprep.subr.bf16.mxu1 %v4039_v7 }
  0x45   : > { %1096 = vmatpush2.bf16.msra.mxu0 %v3960_v55 }
  0x46   : > { %1097 = vmatprep.subr.bf16.mxu0 %v3964_v57  ;;  %1137 = vmatpush2.bf16.msra.mxu1 %v4041_v9  ;;  %v580_v57 = vrot.slane %v4724_v46, %v579_v51  ;;  %v4093_v51 = vld [vmem:[%s5461_s3 + $0xc0] ss:$8 sps:$4 sm:$0xff]  }
  0x47   : > { %1138 = vmatprep.subr.bf16.mxu1 %v4045_v11 }
  0x49   : > { %1098 = vmatpush2.bf16.msra.mxu0 %v3966_v59 }
  0x4a   : > { %1153 = vmatprep.subr.bf16.mxu0 %v3972_v61  ;;  %1139 = vmatpush2.bf16.msra.mxu1 %v4047_v13 }
  0x4b   : > { %1140 = vmatprep.subr.bf16.mxu1 %v4051_v15 }
  0x4c   : > { %1100 = vmatmul.mubr.bf16.vlgmr.msra.gmra.mxu0 %v4588_v63 }
  0x4d   : > { %1154 = vmatpush1.bf16.msra.mxu0 %v3970_v0  ;;  %1185 = vmatprep.mubr.bf16.mxu0 %v4483_v29  ;;  %v4030_v29 = vld [vmem:[%s5459_s1 + $0x280] ss:$24 sps:$4 sm:$0xff]  }
  0x4e   : > { %1155 = vmatprep.subr.bf16.mxu0 %v3978_v2  ;;  %1141 = vmatpush2.bf16.msra.mxu1 %v4053_v17 }
  0x51   : > { %1156 = vmatpush1.bf16.msra.mxu0 %v3976_v4  ;;  %1143 = vmatmul.mubr.bf16.vlgmr.msra.gmra.mxu1 %v4588_v63 }
  0x52   : > { %1157 = vmatprep.subr.bf16.mxu0 %v3984_v6 }
  0x55   : > { %1158 = vmatpush1.bf16.msra.mxu0 %v3982_v8 }
  0x56   : > { %1159 = vmatprep.subr.bf16.mxu0 %v3990_v10 }
  0x59   : > { %1160 = vmatpush1.bf16.msra.mxu0 %v3988_v12 }
  0x5a   : > { %1161 = vmatprep.subr.bf16.mxu0 %v3996_v14 }
  0x5d   : > { %1162 = vmatpush1.bf16.msra.mxu0 %v3994_v16 }
  0x5e   : > { %1163 = vmatprep.subr.bf16.mxu0 %v4002_v18  ;;  %v4060_v18 = vld [vmem:[%s5461_s3 + $0x70] ss:$8 sps:$4 sm:$0xff]  }
  0x61   : > { %1164 = vmatpush1.bf16.msra.mxu0 %v4000_v19  ;;  %v4062_v19 = vld [vmem:[%s5461_s3 + $0x74] ss:$8 sps:$4 sm:$0xff]  }
  0x62   : > { %1165 = vmatprep.subr.bf16.mxu0 %v4008_v20  ;;  %v4065_v20 = vld [vmem:[%s5461_s3 + $0x64] ss:$8 sps:$4 sm:$0xff]   ;;  %1554 = vmatprep.subr.bf16.mxu1 %v4062_v19 }
  0x63   : > { %1555 = vmatpush1.bf16.msra.mxu1 %v4060_v18 }
  0x64   : > { %1556 = vmatprep.subr.bf16.mxu1 %v4065_v20 }
  0x65   : > { %1166 = vmatpush1.bf16.msra.mxu0 %v4006_v21  ;;  %v4063_v21 = vld [vmem:[%s5461_s3 + $0x60] ss:$8 sps:$4 sm:$0xff]  }
  0x66   : > { %1167 = vmatprep.subr.bf16.mxu0 %v4014_v22 }
  0x67   : > { %1557 = vmatpush1.bf16.msra.mxu1 %v4063_v21 }
  0x69   : > { %1168 = vmatpush1.bf16.msra.mxu0 %v4012_v23  ;;  %v4068_v23 = vld [vmem:[%s5461_s3 + $0x54] ss:$8 sps:$4 sm:$0xff]  }
  0x6a   : > { %1169 = vmatprep.subr.bf16.mxu0 %v4020_v24  ;;  %v4066_v24 = vld [vmem:[%s5461_s3 + $0x50] ss:$8 sps:$4 sm:$0xff]   ;;  %1558 = vmatprep.subr.bf16.mxu1 %v4068_v23 }
  0x6b   : > { %1559 = vmatpush1.bf16.msra.mxu1 %v4066_v24 }
  0x6d   : > { %1170 = vmatpush2.bf16.msra.mxu0 %v4018_v25  ;;  %v4071_v25 = vld [vmem:[%s5461_s3 + $0x44] ss:$8 sps:$4 sm:$0xff]  }
  0x6e   : > { %1171 = vmatprep.subr.bf16.mxu0 %v4026_v26  ;;  %v4096_v26 = vld [vmem:[%s5461_s3 + $0x140] ss:$8 sps:$4 sm:$0xff]   ;;  %1560 = vmatprep.subr.bf16.mxu1 %v4071_v25 }
  0x71   : > { %1172 = vmatpush2.bf16.msra.mxu0 %v4024_v27  ;;  %v4098_v27 = vld [vmem:[%s5461_s3 + $0x144] ss:$8 sps:$4 sm:$0xff]  }
  0x72   : > { %1173 = vmatprep.subr.bf16.mxu0 %v4032_v28  ;;  %v4104_v28 = vld [vmem:[%s5461_s3 + $0x134] ss:$8 sps:$4 sm:$0xff]  }
  0x75   : > { %1174 = vmatpush2.bf16.msra.mxu0 %v4030_v29  ;;  %v4069_v29 = vld [vmem:[%s5461_s3 + $0x40] ss:$8 sps:$4 sm:$0xff]  }
  0x76   : > { %1175 = vmatprep.subr.bf16.mxu0 %v4038_v30  ;;  %v4102_v30 = vld [vmem:[%s5461_s3 + $0x130] ss:$8 sps:$4 sm:$0xff]   ;;  %1561 = vmatpush1.bf16.msra.mxu1 %v4069_v29 }
  0x79   : > { %1176 = vmatpush2.bf16.msra.mxu0 %v4036_v31  ;;  %v4074_v31 = vld [vmem:[%s5461_s3 + $0x34] ss:$8 sps:$4 sm:$0xff]  }
  0x7a   : > { %1177 = vmatprep.subr.bf16.mxu0 %v4044_v32  ;;  %v4072_v32 = vld [vmem:[%s5461_s3 + $0x30] ss:$8 sps:$4 sm:$0xff]   ;;  %1562 = vmatprep.subr.bf16.mxu1 %v4074_v31 }
  0x7b   : > { %1563 = vmatpush1.bf16.msra.mxu1 %v4072_v32 }
  0x7d   : > { %1178 = vmatpush2.bf16.msra.mxu0 %v4042_v33  ;;  %v4077_v33 = vld [vmem:[%s5461_s3 + $0x24] ss:$8 sps:$4 sm:$0xff]  }
  0x7e   : > { %1179 = vmatprep.subr.bf16.mxu0 %v4050_v34  ;;  %v4075_v34 = vld [vmem:[%s5461_s3 + $0x20] ss:$8 sps:$4 sm:$0xff]   ;;  %1564 = vmatprep.subr.bf16.mxu1 %v4077_v33 }
  0x7f   : > { %1565 = vmatpush1.bf16.msra.mxu1 %v4075_v34  ;;  %v4308_v34 = vmov 0  }
  0x81   : > { %1180 = vmatpush2.bf16.msra.mxu0 %v4048_v35  ;;  %v4080_v35 = vld [vmem:[%s5461_s3 + $0x14] ss:$8 sps:$4 sm:$0xff]  }
  0x82   : > { %1181 = vmatprep.subr.bf16.mxu0 %v4056_v36  ;;  %v4078_v36 = vld [vmem:[%s5461_s3 + $0x10] ss:$8 sps:$4 sm:$0xff]   ;;  %1566 = vmatprep.subr.bf16.mxu1 %v4080_v35 }
  0x83   : > { %1567 = vmatpush1.bf16.msra.mxu1 %v4078_v36 }
  0x85   : > { %1182 = vmatpush2.bf16.msra.mxu0 %v4054_v37  ;;  %v4083_v37 = vld [vmem:[%s5461_s3 + $0x4] ss:$8 sps:$4 sm:$0xff]  }
  0x86   : > { %1183 = vmatprep.subr.bf16.mxu0 %v4059_v38  ;;  %v4081_v38 = vld [vmem:[%s5461_s3] ss:$8 sps:$4 sm:$0xff]   ;;  %1568 = vmatprep.subr.bf16.mxu1 %v4083_v37 }
  0x87   : > { %1569 = vmatpush1.bf16.msra.mxu1 %v4081_v38 }
  0x89   : > { %1184 = vmatpush2.bf16.msra.mxu0 %v4057_v39  ;;  %v4086_v39 = vld [vmem:[%s5461_s3 + $0xf4] ss:$8 sps:$4 sm:$0xff]  }
  0x8a   : > { %1603 = vmatprep.subr.bf16.mxu0 %v4098_v27  ;;  %1570 = vmatprep.subr.bf16.mxu1 %v4086_v39 }
  0x8b   : > { %1571 = vmatpush2.bf16.msra.mxu1 %v4084_v40 }
  0x8c   : > { %1186 = vmatmul.mubr.bf16.vlgmr.msra.gmra.mxu0 %v4588_v63  ;;  %v568_v63 = vrot.slane %v4724_v46, %v567_v56 }
  0x8d   : > { %1604 = vmatpush1.bf16.msra.mxu0 %v4096_v26  ;;  %1629 = vmatprep.mubr.bf16.mxu0 %v4308_v34 }
  0x8e   : > { %1605 = vmatprep.subr.bf16.mxu0 %v4104_v28 }
  0x91   : > { %1606 = vmatpush1.bf16.msra.mxu0 %v4102_v30 }
 0x10c   : > { %v4714_v41 = vpop.f32.mrf.mxu0 }
 0x10e   : > { %v4719_v45 = vpop.f32.mrf.mxu0 }
 0x110   : > { %v4728_v50 = vpop.f32.mrf.mxu0 }
 0x111   : > { %v1144_v43 = vpop.f32.mrf.mxu1 }
 0x112   : > { %v4732_v55 = vpop.f32.mrf.mxu0  ;;  %v4739_v8 = vadd.f32 %v1144_v43, %v568_v63  ;;  %v4089_v43 = vld [vmem:[%s5461_s3 + $0xe4] ss:$8 sps:$4 sm:$0xff]  }
 0x113   : > { %v1146_v47 = vpop.f32.mrf.mxu1  ;;  %1572 = vmatprep.subr.bf16.mxu1 %v4089_v43 }
 0x114   : > { %v1147_v53 = vadd.f32 %v1146_v47, %v572_v48  ;;  %v1198_v15 = vmax.f32 %v4739_v8, 0.0  ;;  %v4092_v47 = vld [vmem:[%s5461_s3 + $0xd4] ss:$8 sps:$4 sm:$0xff]   ;;  %1573 = vmatpush2.bf16.msra.mxu1 %v4087_v44 }
 0x115   : > { %v1148_v52 = vpop.f32.mrf.mxu1  ;;  %1574 = vmatprep.subr.bf16.mxu1 %v4092_v47 }
 0x116   : > { %v1199_v60 = vmax.f32 %v1147_v53, 0.0  ;;  %v4741_v9 = vadd.f32 %v1148_v52, %v568_v63  ;;  %v4101_v52 = vld [vmem:[%s5461_s3 + $0xb4] ss:$8 sps:$4 sm:$0xff]   ;;  %v4099_v53 = vld [vmem:[%s5461_s3 + $0xb0] ss:$8 sps:$4 sm:$0xff]  }
 0x117   : > { %v1150_v58 = vpop.f32.mrf.mxu1 }
 0x118   : > { %v1151_v0 = vadd.f32 %v1150_v58, %v572_v48  ;;  %v1204_v16 = vmax.f32 %v4741_v9, 0.0  ;;  %v4090_v48 = vld [vmem:[%s5461_s3 + $0xd0] ss:$8 sps:$4 sm:$0xff]  }
 0x119   : > { %1575 = vmatpush2.bf16.msra.mxu1 %v4090_v48 }
 0x11a   : > { %v1205_v10 = vmax.f32 %v1151_v0, 0.0  ;;  %v3826_v22 = vpack.i.bf16 %v1204_v16, %v1198_v15  ;;  %1576 = vmatprep.subr.bf16.mxu1 %v4095_v49 }
 0x11d   : > { %1577 = vmatpush2.bf16.msra.mxu1 %v4093_v51 }
 0x11e   : > { %1578 = vmatprep.subr.bf16.mxu1 %v4101_v52 }
 0x121   : > { %1579 = vmatpush2.bf16.msra.mxu1 %v4099_v53 }
 0x14c   : > { %v1187_v59 = vpop.f32.mrf.mxu0 }
 0x14d   : > { %v1188_v61 = vadd.f32 %v1187_v59, %v576_v54  ;;  %v4107_v59 = vld [vmem:[%s5461_s3 + $0xa4] ss:$8 sps:$4 sm:$0xff]  }
 0x14e   : > { %v1189_v62 = vpop.f32.mrf.mxu0  ;;  %1580 = vmatprep.subr.bf16.mxu1 %v4107_v59 }
 0x14f   : > { %v1200_v1 = vmax.f32 %v1188_v61, 0.0  ;;  %v1190_v2 = vadd.f32 %v1189_v62, %v580_v57  ;;  %v4105_v61 = vld [vmem:[%s5461_s3 + $0xa0] ss:$8 sps:$4 sm:$0xff]  }
 0x150   : > { %v1191_v3 = vpop.f32.mrf.mxu0  ;;  %v4108_v62 = vld [vmem:[%s5461_s3 + $0x120] ss:$8 sps:$4 sm:$0xff]   ;;  %1581 = vmatpush2.bf16.msra.mxu1 %v4105_v61 }
 0x151   : > { %v1201_v4 = vmax.f32 %v1190_v2, 0.0  ;;  %v1192_v5 = vadd.f32 %v1191_v3, %v576_v54  ;;  %v3811_v6 = vpack.i.bf16 %v1200_v1, %v1199_v60  ;;  %v563_v54 = vsub.s32 1, %v4716_v42  ;;  %v4110_v60 = vld [vmem:[%s5461_s3 + $0x124] ss:$8 sps:$4 sm:$0xff]  }
 0x152   : > { %v1193_v7 = vpop.f32.mrf.mxu0  ;;  %1607 = vmatprep.subr.bf16.mxu0 %v4110_v60 }
 0x153   : > { %v1194_v11 = vadd.f32 %v1193_v7, %v580_v57  ;;  %3812 = vrot.lane.b32.xlu0 %v3811_v6, %s4307_s28  ;;  %v3816_v12 = vpack.i.bf16 %v1205_v10, %v1201_v4  ;;  %v1206_v13 = vmax.f32 %v1192_v5, 0.0  ;;  %v559_v57 = vsub.s32 0, %v4716_v42  ;;  %1608 = vmatpush1.bf16.msra.mxu0 %v4108_v62  ;;  %v4113_v4 = vld [vmem:[%s5461_s3 + $0x94] ss:$8 sps:$4 sm:$0xff]   ;;  %v4111_v6 = vld [vmem:[%s5461_s3 + $0x90] ss:$8 sps:$4 sm:$0xff]  }
 0x154   : > { %v564_v58 = vrot.slane %v4724_v46, %v563_v54  ;;  %v4116_v5 = vld [vmem:[%s5461_s3 + $0x114] ss:$8 sps:$4 sm:$0xff]   ;;  %v4114_v7 = vld [vmem:[%s5461_s3 + $0x110] ss:$8 sps:$4 sm:$0xff]   ;;  %1582 = vmatprep.subr.bf16.mxu1 %v4113_v4 }
 0x155   : > { %v1207_v14 = vmax.f32 %v1194_v11, 0.0  ;;  %v560_v2 = vrot.slane %v4724_v46, %v559_v57  ;;  %1609 = vmatprep.subr.bf16.mxu0 %v4116_v5  ;;  %1583 = vmatpush2.bf16.msra.mxu1 %v4111_v6 }
 0x156   : > { %v1104_v3 = vadd.f32 %v4719_v45, %v564_v58  ;;  %v1108_v46 = vadd.f32 %v4732_v55, %v564_v58  ;;  %v4122_v55 = vld [vmem:[%s5461_s3 + $0x104] ss:$8 sps:$4 sm:$0xff]  }
 0x157   : > { %3817 = vrot.lane.b32.xlu0 %v3816_v12, %s4307_s28  ;;  %v3821_v17 = vpack.i.bf16 %v1207_v14, %v1206_v13  ;;  %1610 = vmatpush1.bf16.msra.mxu0 %v4114_v7  ;;  %v1102_v12 = vadd.f32 %v4714_v41, %v560_v2  ;;  %v4120_v41 = vld [vmem:[%s5461_s3 + $0x100] ss:$8 sps:$4 sm:$0xff]   ;;  %v1106_v23 = vadd.f32 %v4728_v50, %v560_v2 }
 0x158   : > { %v1197_v13 = vmax.f32 %v1104_v3, 0.0  ;;  %v1203_v24 = vmax.f32 %v1108_v46, 0.0  ;;  %1611 = vmatprep.subr.bf16.mxu0 %v4122_v55  ;;  %v4126_v55 = vld [vmem:[%s5462_s4 + $0x90] ss:$12 sps:$4 sm:$0xff]  }
 0x159   : > { %3822 = vrot.lane.b32.xlu1 %v3821_v17, %s4307_s28  ;;  %v4119_v17 = vld [vmem:[%s5461_s3 + $0x84] ss:$8 sps:$4 sm:$0xff]   ;;  %v1196_v8 = vmax.f32 %v1102_v12, 0.0 }
 0x15a   : > { %1584 = vmatprep.subr.bf16.mxu1 %v4119_v17  ;;  %v4125_v12 = vld [vmem:[%s5462_s4 + $0xac] ss:$12 sps:$4 sm:$0xff]  }
 0x15b   : > { %1612 = vmatpush1.bf16.msra.mxu0 %v4120_v41  ;;  %v4131_v17 = vld [vmem:[%s5462_s4 + $0x22c] ss:$12 sps:$4 sm:$0xff]   ;;  %v4140_v41 = vld [vmem:[%s5462_s4 + $0x64] ss:$12 sps:$4 sm:$0xff]  }
 0x15c   : > { %2414 = vmatprep.subr.bf16.mxu0 %v4131_v17 }
 0x15d   : > { %3827 = vrot.lane.b32.xlu1 %v3826_v22, %s4307_s28  ;;  %v4117_v22 = vld [vmem:[%s5461_s3 + $0x80] ss:$8 sps:$4 sm:$0xff]  }
 0x15e   : > { %1585 = vmatpush2.bf16.msra.mxu1 %v4117_v22  ;;  %v4132_v22 = vld [vmem:[%s5462_s4 + $0x78] ss:$12 sps:$4 sm:$0xff]  }
 0x15f   : > { %2371 = vmatprep.subr.bf16.mxu1 %v4125_v12  ;;  %v4209_v12 = vld [vmem:[%s5462_s4 + $0xc0] ss:$12 sps:$4 sm:$0xff]  }
 0x1c5   : > { %v3813_v63 = vpop.permute.xlu0 %3812 }
 0x1c6   : > { %v3815_v0 = vunpack.i.h.bf16 %v3813_v63  ;;  %v3814_v1 = vunpack.i.l.bf16 %v3813_v63 }
 0x1c8   : > { %v1234_v10 = vsel %vm1232_vm1, %v3814_v1, %v3815_v0 }
 0x1c9   : > { %v3818_v45 = vpop.permute.xlu0 %3817  ;;  %v1246_v25 = vmax.f32 %v1197_v13, %v1234_v10  ;;  %v4128_v13 = vld [vmem:[%s5462_s4 + $0x94] ss:$12 sps:$4 sm:$0xff]  }
 0x1ca   : > { %v3819_v11 = vunpack.i.l.bf16 %v3818_v45  ;;  %v3820_v18 = vunpack.i.h.bf16 %v3818_v45 }
 0x1cb   : > { %v3823_v14 = vpop.permute.xlu1 %3822 }
 0x1cc   : > { %v1235_v19 = vsel %vm1232_vm1, %v3815_v0, %v3819_v11  ;;  %v3825_v20 = vunpack.i.h.bf16 %v3823_v14  ;;  %v3824_v21 = vunpack.i.l.bf16 %v3823_v14  ;;  %v4123_v11 = vld [vmem:[%s5462_s4 + $0xa8] ss:$12 sps:$4 sm:$0xff]  }
 0x1cd   : > { %v1247_v26 = vmax.f32 %v1198_v15, %v1235_v19  ;;  %v1202_v15 = vmax.f32 %v1106_v23, 0.0  ;;  %v4129_v14 = vld [vmem:[%s5462_s4 + $0x228] ss:$12 sps:$4 sm:$0xff]   ;;  %v4141_v23 = vld [vmem:[%s5462_s4 + $0x1f8] ss:$12 sps:$4 sm:$0xff]  }
 0x1ce   : > { %v1237_v27 = vsel %vm1232_vm1, %v3820_v18, %v3824_v21  ;;  %v1238_v28 = vsel %vm1232_vm1, %v3824_v21, %v3825_v20  ;;  %v4134_v19 = vld [vmem:[%s5462_s4 + $0x7c] ss:$12 sps:$4 sm:$0xff]  }
 0x1cf   : > { %v3828_v29 = vpop.permute.xlu1 %3827  ;;  %v3831_v30 = vpack.i.bf16 %v1247_v26, %v1246_v25  ;;  %v1249_v31 = vmax.f32 %v1203_v24, %v1237_v27  ;;  %v1250_v32 = vmax.f32 %v1204_v16, %v1238_v28  ;;  %v4135_v20 = vld [vmem:[%s5462_s4 + $0x210] ss:$12 sps:$4 sm:$0xff]   ;;  %v4147_v27 = vld [vmem:[%s5462_s4 + $0x1e0] ss:$12 sps:$4 sm:$0xff]  }
 0x1d0   : > { %v3830_v50 = vunpack.i.h.bf16 %v3828_v29  ;;  %v3829_v33 = vunpack.i.l.bf16 %v3828_v29  ;;  %v4143_v21 = vld [vmem:[%s5462_s4 + $0x1fc] ss:$12 sps:$4 sm:$0xff]   ;;  %v4149_v24 = vld [vmem:[%s5462_s4 + $0x1e4] ss:$12 sps:$4 sm:$0xff]   ;;  %v4155_v28 = vld [vmem:[%s5462_s4 + $0x1cc] ss:$12 sps:$4 sm:$0xff]  }
 0x1d1   : > { %3832 = vrot.lane.b32.xlu0 %v3831_v30, %s4309_s29  ;;  %v3841_v35 = vpack.i.bf16 %v1250_v32, %v1249_v31  ;;  %v4144_v29 = vld [vmem:[%s5462_s4 + $0x48] ss:$12 sps:$4 sm:$0xff]  }
 0x1d2   : > { %v1233_v36 = vsel %vm1232_vm1, %v3829_v33, %v3814_v1  ;;  %v1236_v37 = vsel %vm1232_vm1, %v3830_v50, %v3820_v18  ;;  %v4137_v18 = vld [vmem:[%s5462_s4 + $0x214] ss:$12 sps:$4 sm:$0xff]   ;;  %v4150_v50 = vld [vmem:[%s5462_s4 + $0x30] ss:$12 sps:$4 sm:$0xff]   ;;  %vm3263_vm1 = vcmask 1041408  }
 0x1d3   : > { %v1245_v38 = vmax.f32 %v1196_v8, %v1233_v36  ;;  %v1248_v39 = vmax.f32 %v1202_v15, %v1236_v37  ;;  %3842 = vrot.lane.b32.xlu1 %v3841_v35, %s4309_s29  ;;  %v4152_v30 = vld [vmem:[%s5462_s4 + $0x34] ss:$12 sps:$4 sm:$0xff]   ;;  %v4158_v33 = vld [vmem:[%s5462_s4 + $0x1c] ss:$12 sps:$4 sm:$0xff]   ;;  %v4156_v35 = vld [vmem:[%s5462_s4 + $0x18] ss:$12 sps:$4 sm:$0xff]  }
 0x1d4   : > { %v4159_v8 = vld [vmem:[%s5462_s4 + $0x1b0] ss:$12 sps:$4 sm:$0xff]   ;;  %v4165_v37 = vld [vmem:[%s5462_s4 + $0x198] ss:$12 sps:$4 sm:$0xff]  }
 0x1d5   : > { %v3846_v9 = vpack.i.bf16 %v1248_v39, %v1245_v38  ;;  %v4167_v15 = vld [vmem:[%s5462_s4 + $0x19c] ss:$12 sps:$4 sm:$0xff]   ;;  %v4164_v36 = vld [vmem:[%s5462_s4 + $0x4] ss:$12 sps:$4 sm:$0xff]  }
 0x1d7   : > { %3847 = vrot.lane.b32.xlu1 %v3846_v9, %s4310_s26  ;;  %3837 = vrot.lane.b32.xlu0 %v3846_v9, %s4309_s29  ;;  %v4162_v9 = vld [vmem:[%s5462_s4] ss:$12 sps:$4 sm:$0xff]   ;;  %s4315_s26 = smov 32  }
 0x243   : > { %v3833_v16 = vpop.permute.xlu0 %3832 }
 0x244   : > { %v3835_v40 = vunpack.i.h.bf16 %v3833_v16  ;;  %v3834_v43 = vunpack.i.l.bf16 %v3833_v16  ;;  %v4170_v16 = vld [vmem:[%s5462_s4 + $0x16c] ss:$12 sps:$4 sm:$0xff]  }
 0x245   : > { %v3843_v44 = vpop.permute.xlu1 %3842 }
 0x246   : > { %v1271_v47 = vsel %vm1269_vm2, %v3834_v43, %v3835_v40  ;;  %v3845_v48 = vunpack.i.h.bf16 %v3843_v44  ;;  %v3844_v49 = vunpack.i.l.bf16 %v3843_v44 }
 0x247   : > { %v1290_v58 = vmax.f32 %v1246_v25, %v1271_v47  ;;  %v4138_v25 = vld [vmem:[%s5462_s4 + $0x60] ss:$12 sps:$4 sm:$0xff]   ;;  %v4168_v47 = vld [vmem:[%s5462_s4 + $0x168] ss:$12 sps:$4 sm:$0xff]  }
 0x248   : > { %v1273_v51 = vsel %vm1269_vm2, %v3844_v49, %v3845_v48 }
 0x249   : > { %v3848_v52 = vpop.permute.xlu1 %3847  ;;  %v3838_v53 = vpop.permute.xlu0 %3837  ;;  %v1293_v59 = vmax.f32 %v1249_v31, %v1273_v51  ;;  %v4153_v31 = vld [vmem:[%s5462_s4 + $0x1c8] ss:$12 sps:$4 sm:$0xff]  }
 0x24a   : > { %v3850_v60 = vunpack.i.h.bf16 %v3848_v52  ;;  %v3849_v61 = vunpack.i.l.bf16 %v3848_v52  ;;  %v3840_v62 = vunpack.i.h.bf16 %v3838_v53  ;;  %v3839_v63 = vunpack.i.l.bf16 %v3838_v53  ;;  %v4184_v51 = vld [vmem:[%s5462_s4 + $0x2d4] ss:$12 sps:$4 sm:$0xff]   ;;  %v4174_v52 = vld [vmem:[%s5462_s4 + $0x150] ss:$12 sps:$4 sm:$0xff]  }
 0x24b   : > { %v1296_v0 = vpack.c.bf16 %v1293_v59, %v1290_v58  ;;  %v4181_v53 = vld [vmem:[%s5462_s4 + $0x13c] ss:$12 sps:$4 sm:$0xff]  }
 0x24c   : > { %v1288_v1 = vsel %vm1286_vm3, %v3845_v48, %v3850_v60  ;;  %v1287_v2 = vsel %vm1286_vm3, %v3835_v40, %v3849_v61  ;;  %v1272_v3 = vsel %vm1269_vm2, %v3840_v62, %v3844_v49  ;;  %v1270_v4 = vsel %vm1269_vm2, %v3839_v63, %v3834_v43  ;;  %v4171_v40 = vld [vmem:[%s5462_s4 + $0x180] ss:$12 sps:$4 sm:$0xff]   ;;  %v4182_v58 = vld [vmem:[%s5462_s4 + $0x2d0] ss:$12 sps:$4 sm:$0xff]   ;;  %v4179_v60 = vld [vmem:[%s5462_s4 + $0x138] ss:$12 sps:$4 sm:$0xff]  }
 0x24d   : > { %v1294_v5 = vmax.f32 %v1250_v32, %v1288_v1  ;;  %v1291_v6 = vmax.f32 %v1247_v26, %v1287_v2  ;;  %v1292_v7 = vmax.f32 %v1248_v39, %v1272_v3  ;;  %v1289_v46 = vmax.f32 %v1245_v38, %v1270_v4  ;;  %1586 = vmatprep.mubr.bf16.mxu1 %v1296_v0  ;;  %v4146_v26 = vld [vmem:[%s5462_s4 + $0x4c] ss:$12 sps:$4 sm:$0xff]   ;;  %v4161_v32 = vld [vmem:[%s5462_s4 + $0x1b4] ss:$12 sps:$4 sm:$0xff]   ;;  %v4173_v38 = vld [vmem:[%s5462_s4 + $0x184] ss:$12 sps:$4 sm:$0xff]  }
 0x24e   : > { %v1834_v39 = vld [vmem:[%s5462_s4 + $0x2e8] sm:$0xff]  ;;  %v4176_v48 = vld [vmem:[%s5462_s4 + $0x154] ss:$12 sps:$4 sm:$0xff]   ;;  %v4187_v61 = vld [vmem:[%s5462_s4 + $0x124] ss:$12 sps:$4 sm:$0xff]  }
 0x24f   : > { %v1297_v45 = vpack.c.bf16 %v1294_v5, %v1291_v6  ;;  %v1295_v10 = vpack.c.bf16 %v1292_v7, %v1289_v46  ;;  %v3608_v43 = vcombine.high %v1834_v39, %v1834_v39  ;;  %v3607_v44 = vcombine.low %v1834_v39, %v1834_v39  ;;  %v4190_v59 = vld [vmem:[%s5462_s4 + $0x2bc] ss:$12 sps:$4 sm:$0xff]   ;;  %v4188_v62 = vld [vmem:[%s5462_s4 + $0x2b8] ss:$12 sps:$4 sm:$0xff]   ;;  %v4185_v0 = vld [vmem:[%s5462_s4 + $0x120] ss:$12 sps:$4 sm:$0xff]  }
 0x250   : > { %v4196_v63 = vld [vmem:[%s5462_s4 + $0x2a4] ss:$12 sps:$4 sm:$0xff]   ;;  %v4193_v1 = vld [vmem:[%s5462_s4 + $0x10c] ss:$12 sps:$4 sm:$0xff]   ;;  %v4191_v4 = vld [vmem:[%s5462_s4 + $0x108] ss:$12 sps:$4 sm:$0xff]  }
 0x251   : > { %1587 = vmatmul.mubr.bf16.vlgmr.msra.gmra.mxu1 %v1295_v10  ;;  %3513 = vmatmul.mubr.msk.bf16.vlgmr.msra.gmra.mxu0 %vm1550_vm4, %v1297_v45  ;;  %v2363_v49 = vsel %vm2361_vm5, %v3607_v44, 0  ;;  %v4194_v2 = vld [vmem:[%s5462_s4 + $0x2a0] ss:$12 sps:$4 sm:$0xff]   ;;  %v4200_v6 = vld [vmem:[%s5462_s4 + $0x288] ss:$12 sps:$4 sm:$0xff]  }
 0x252   : > { %2372 = vmatpush1.bf16.msra.mxu1 %v4123_v11  ;;  %2415 = vmatpush1.bf16.msra.mxu0 %v4129_v14  ;;  %v4202_v3 = vld [vmem:[%s5462_s4 + $0x28c] ss:$12 sps:$4 sm:$0xff]   ;;  %v4199_v5 = vld [vmem:[%s5462_s4 + $0xf4] ss:$12 sps:$4 sm:$0xff]   ;;  %v4197_v46 = vld [vmem:[%s5462_s4 + $0xf0] ss:$12 sps:$4 sm:$0xff]  }
 0x253   : > { %2373 = vmatprep.subr.bf16.mxu1 %v4128_v13  ;;  %2416 = vmatprep.subr.bf16.mxu0 %v4137_v18  ;;  %v4208_v7 = vld [vmem:[%s5462_s4 + $0x274] ss:$12 sps:$4 sm:$0xff]   ;;  %v4205_v45 = vld [vmem:[%s5462_s4 + $0xdc] ss:$12 sps:$4 sm:$0xff]   ;;  %v4203_v11 = vld [vmem:[%s5462_s4 + $0xd8] ss:$12 sps:$4 sm:$0xff]  }
 0x254   : > { %v4206_v10 = vld [vmem:[%s5462_s4 + $0x270] ss:$12 sps:$4 sm:$0xff]  }
 0x255   : > { %v4211_v13 = vld [vmem:[%s5462_s4 + $0xc4] ss:$12 sps:$4 sm:$0xff]  }
 0x256   : > { %2374 = vmatpush1.bf16.msra.mxu1 %v4126_v55  ;;  %2417 = vmatpush1.bf16.msra.mxu0 %v4135_v20  ;;  %v4214_v55 = vld [vmem:[%s5462_s4 + $0x25c] ss:$12 sps:$4 sm:$0xff]   ;;  %v4212_v20 = vld [vmem:[%s5462_s4 + $0x258] ss:$12 sps:$4 sm:$0xff]   ;;  %v4222_v39 = vld [vmem:[%s5462_s4 + $0x2f0] ss:$0 sps:$4 sm:$0xff]  }
 0x257   : > { %2375 = vmatprep.subr.bf16.mxu1 %v4134_v19  ;;  %2418 = vmatprep.subr.bf16.mxu0 %v4143_v21 }
 0x25a   : > { %2376 = vmatpush1.bf16.msra.mxu1 %v4132_v22  ;;  %2419 = vmatpush1.bf16.msra.mxu0 %v4141_v23  ;;  %v4215_v22 = vld [vmem:[%s5462_s4 + $0x170] ss:$12 sps:$4 sm:$0xff]  }
 0x25b   : > { %2377 = vmatprep.subr.bf16.mxu1 %v4140_v41  ;;  %2420 = vmatprep.subr.bf16.mxu0 %v4149_v24 }
 0x25e   : > { %2378 = vmatpush1.bf16.msra.mxu1 %v4138_v25  ;;  %2421 = vmatpush1.bf16.msra.mxu0 %v4147_v27 }
 0x25f   : > { %2379 = vmatprep.subr.bf16.mxu1 %v4146_v26  ;;  %2422 = vmatprep.subr.bf16.mxu0 %v4155_v28  ;;  %v4219_v26 = vld [vmem:[%s5462_s4 + $0x244] ss:$12 sps:$4 sm:$0xff]  }
 0x262   : > { %2380 = vmatpush1.bf16.msra.mxu1 %v4144_v29  ;;  %2423 = vmatpush1.bf16.msra.mxu0 %v4153_v31  ;;  %v4217_v29 = vld [vmem:[%s5462_s4 + $0x240] ss:$12 sps:$4 sm:$0xff]  }
 0x263   : > { %2381 = vmatprep.subr.bf16.mxu1 %v4152_v30  ;;  %2424 = vmatprep.subr.bf16.mxu0 %v4161_v32 }
 0x266   : > { %2382 = vmatpush1.bf16.msra.mxu1 %v4150_v50  ;;  %2425 = vmatpush1.bf16.msra.mxu0 %v4159_v8 }
 0x267   : > { %2383 = vmatprep.subr.bf16.mxu1 %v4158_v33  ;;  %2426 = vmatprep.subr.bf16.mxu0 %v4167_v15 }
 0x26a   : > { %2384 = vmatpush1.bf16.msra.mxu1 %v4156_v35  ;;  %2427 = vmatpush1.bf16.msra.mxu0 %v4165_v37 }
 0x26b   : > { %2385 = vmatprep.subr.bf16.mxu1 %v4164_v36  ;;  %2428 = vmatprep.subr.bf16.mxu0 %v4173_v38 }
 0x26e   : > { %2386 = vmatpush1.bf16.msra.mxu1 %v4162_v9  ;;  %2429 = vmatpush1.bf16.msra.mxu0 %v4171_v40 }
 0x26f   : > { %2387 = vmatprep.subr.bf16.mxu1 %v4170_v16  ;;  %3610 = vmatprep.subr.msk.bf16.mxu0 %vm2361_vm5, %v3608_v43 }
 0x272   : > { %2388 = vmatpush2.bf16.msra.mxu1 %v4168_v47  ;;  %2431 = vmatpush2.bf16.msra.mxu0 %v2363_v49 }
 0x273   : > { %2389 = vmatprep.subr.bf16.mxu1 %v4176_v48  ;;  %2432 = vmatprep.subr.bf16.mxu0 %v4184_v51 }
 0x276   : > { %2390 = vmatpush2.bf16.msra.mxu1 %v4174_v52  ;;  %2433 = vmatpush2.bf16.msra.mxu0 %v4182_v58 }
 0x277   : > { %2391 = vmatprep.subr.bf16.mxu1 %v4181_v53  ;;  %2434 = vmatprep.subr.bf16.mxu0 %v4190_v59 }
 0x27a   : > { %2392 = vmatpush2.bf16.msra.mxu1 %v4179_v60  ;;  %2435 = vmatpush2.bf16.msra.mxu0 %v4188_v62 }
 0x27b   : > { %2393 = vmatprep.subr.bf16.mxu1 %v4187_v61  ;;  %2436 = vmatprep.subr.bf16.mxu0 %v4196_v63 }
 0x27e   : > { %2394 = vmatpush2.bf16.msra.mxu1 %v4185_v0  ;;  %2437 = vmatpush2.bf16.msra.mxu0 %v4194_v2 }
 0x27f   : > { %2395 = vmatprep.subr.bf16.mxu1 %v4193_v1  ;;  %2438 = vmatprep.subr.bf16.mxu0 %v4202_v3 }
 0x282   : > { %2396 = vmatpush2.bf16.msra.mxu1 %v4191_v4  ;;  %2439 = vmatpush2.bf16.msra.mxu0 %v4200_v6  ;;  %v4216_v4 = vld [vmem:[%s5462_s4 + $0xb0] ss:$12 sps:$4 sm:$0xff]  }
 0x283   : > { %2397 = vmatprep.subr.bf16.mxu1 %v4199_v5  ;;  %2440 = vmatprep.subr.bf16.mxu0 %v4208_v7  ;;  %v4220_v7 = vld [vmem:[%s5462_s4 + $0x158] ss:$12 sps:$4 sm:$0xff]  }
 0x286   : > { %2398 = vmatpush2.bf16.msra.mxu1 %v4197_v46  ;;  %2441 = vmatpush2.bf16.msra.mxu0 %v4206_v10 }
 0x287   : > { %2399 = vmatprep.subr.bf16.mxu1 %v4205_v45  ;;  %2442 = vmatprep.subr.bf16.mxu0 %v4214_v55 }
 0x28a   : > { %2400 = vmatpush2.bf16.msra.mxu1 %v4203_v11  ;;  %2443 = vmatpush2.bf16.msra.mxu0 %v4212_v20 }
 0x28b   : > { %2401 = vmatprep.subr.bf16.mxu1 %v4211_v13  ;;  %2444 = vmatprep.subr.bf16.mxu0 %v4219_v26  ;;  %v4221_v13 = vld [vmem:[%s5462_s4 + $0x98] ss:$12 sps:$4 sm:$0xff]   ;;  %v4230_v26 = vld [vmem:[%s5462_s4 + $0x2c0] ss:$12 sps:$4 sm:$0xff]  }
 0x28e   : > { %2402 = vmatpush2.bf16.msra.mxu1 %v4209_v12  ;;  %2445 = vmatpush2.bf16.msra.mxu0 %v4217_v29  ;;  %v4231_v29 = vld [vmem:[%s5462_s4 + $0x200] ss:$12 sps:$4 sm:$0xff]  }
 0x28f   : > { %3671 = vmatprep.subr.bf16.mxu1 %v4215_v22  ;;  %3789 = vmatprep.subr.msk.bf16.mxu0 %vm2361_vm5, %v4222_v39  ;;  %v4223_v22 = vld [vmem:[%s5462_s4 + $0x230] ss:$12 sps:$4 sm:$0xff]   ;;  %v4244_v39 = vld [vmem:[%s5462_s4 + $0xc8] ss:$12 sps:$4 sm:$0xff]  }
 0x311   : > { %v1588_v14 = vpop.f32.mrf.mxu1  ;;  %v1631_v17 = vpop.f32.mrf.mxu0 }
 0x312   : > { %v1632_v21 = vadd.f32 %v1631_v17, %v1588_v14 }
 0x313   : > { %v1590_v18 = vpop.f32.mrf.mxu1  ;;  %v1633_v19 = vpop.f32.mrf.mxu0 }
 0x314   : > { %v1634_v41 = vadd.f32 %v1633_v19, %v1590_v18  ;;  %v1644_v30 = vrot.slane %v1632_v21, 1  ;;  %v1657_v16 = vrot.slane %v1632_v21, 2  ;;  %v4224_v19 = vld [vmem:[%s5462_s4 + $0x140] ss:$12 sps:$4 sm:$0xff]  }
 0x315   : > { %v1592_v23 = vpop.f32.mrf.mxu1  ;;  %v1635_v24 = vpop.f32.mrf.mxu0 }
 0x316   : > { %v1636_v25 = vadd.f32 %v1635_v24, %v1592_v23  ;;  %v1647_v33 = vrot.slane %v1634_v41, 1  ;;  %v1660_v8 = vrot.slane %v1634_v41, 2  ;;  %v4225_v23 = vld [vmem:[%s5462_s4 + $0x80] ss:$12 sps:$4 sm:$0xff]   ;;  %v4228_v24 = vld [vmem:[%s5462_s4 + $0x128] ss:$12 sps:$4 sm:$0xff]  }
 0x317   : > { %v1594_v27 = vpop.f32.mrf.mxu1  ;;  %v1637_v28 = vpop.f32.mrf.mxu0 }
 0x318   : > { %v1645_v31 = vrot.slane %v1636_v25, 1  ;;  %v5100_v32 = vpack.c.bf16 %v1636_v25, %v1632_v21  ;;  %v1638_v50 = vadd.f32 %v1637_v28, %v1594_v27  ;;  %v1658_v15 = vrot.slane %v1636_v25, 2  ;;  %v4227_v25 = vld [vmem:[%s5462_s4 + $0x218] ss:$12 sps:$4 sm:$0xff]   ;;  %v4229_v27 = vld [vmem:[%s5462_s4 + $0x68] ss:$12 sps:$4 sm:$0xff]  }
 0x319   : > { %v4232_v28 = vld [vmem:[%s5462_s4 + $0x110] ss:$12 sps:$4 sm:$0xff]  }
 0x31a   : > { %v1648_v35 = vrot.slane %v1638_v50, 1  ;;  %v1661_v36 = vrot.slane %v1638_v50, 2  ;;  %v1646_v37 = vsel %vm449_vm0, %v1644_v30, %v1645_v31  ;;  %v1654_v38 = vsel %vm449_vm0, %v1645_v31, %v1644_v30  ;;  %v4234_v30 = vld [vmem:[%s5462_s4 + $0x2a8] ss:$12 sps:$4 sm:$0xff]   ;;  %v4233_v31 = vld [vmem:[%s5462_s4 + $0x50] ss:$12 sps:$4 sm:$0xff]  }
 0x31b   : > { %v3851_v9 = vpack.i.bf16 %v1654_v38, %v1646_v37  ;;  %v1659_v48 = vsel %vm1656_vm6, %v1657_v16, %v1658_v15  ;;  %v1667_v52 = vsel %vm1656_vm6, %v1658_v15, %v1657_v16  ;;  %v4237_v15 = vld [vmem:[%s5462_s4 + $0x38] ss:$12 sps:$4 sm:$0xff]   ;;  %v4241_v38 = vld [vmem:[%s5462_s4 + $0x20] ss:$12 sps:$4 sm:$0xff]  }
 0x31c   : > { %v1649_v40 = vsel %vm449_vm0, %v1647_v33, %v1648_v35  ;;  %v1655_v43 = vsel %vm449_vm0, %v1648_v35, %v1647_v33  ;;  %v1662_v44 = vsel %vm1656_vm6, %v1660_v8, %v1661_v36  ;;  %v1668_v49 = vsel %vm1656_vm6, %v1661_v36, %v1660_v8  ;;  %v4235_v33 = vld [vmem:[%s5462_s4 + $0x1e8] ss:$12 sps:$4 sm:$0xff]   ;;  %v4238_v8 = vld [vmem:[%s5462_s4 + $0x290] ss:$12 sps:$4 sm:$0xff]   ;;  %v4240_v35 = vld [vmem:[%s5462_s4 + $0xe0] ss:$12 sps:$4 sm:$0xff]  }
 0x31d   : > { %3852 = vrot.lane.b32.xlu0 %v3851_v9, %s4311_s14  ;;  %v3856_v47 = vpack.i.bf16 %v1655_v43, %v1649_v40  ;;  %v3861_v51 = vpack.i.bf16 %v1662_v44, %v1659_v48  ;;  %v3866_v53 = vpack.i.bf16 %v1668_v49, %v1667_v52  ;;  %v4239_v36 = vld [vmem:[%s5462_s4 + $0x1d0] ss:$12 sps:$4 sm:$0xff]   ;;  %v4242_v37 = vld [vmem:[%s5462_s4 + $0x278] ss:$12 sps:$4 sm:$0xff]   ;;  %v4246_v16 = vld [vmem:[%s5462_s4 + $0x260] ss:$12 sps:$4 sm:$0xff]  }
 0x31e   : > { %v4243_v9 = vld [vmem:[%s5462_s4 + $0x1b8] ss:$12 sps:$4 sm:$0xff]   ;;  %v4245_v40 = vld [vmem:[%s5462_s4 + $0x8] ss:$12 sps:$4 sm:$0xff]   ;;  %v4247_v43 = vld [vmem:[%s5462_s4 + $0x1a0] ss:$12 sps:$4 sm:$0xff]  }
 0x31f   : > { %3857 = vrot.lane.b32.xlu1 %v3856_v47, %s4311_s14  ;;  %v4248_v44 = vld [vmem:[%s5462_s4 + $0x248] ss:$12 sps:$4 sm:$0xff]   ;;  %v1836_v48 = vld [vmem:[%s5463_s5] sm:$0x7]  ;;  %s4314_s14 = smov 31  }
 0x320   : > { %v4249_v47 = vld [vmem:[%s5462_s4 + $0x188] ss:$12 sps:$4 sm:$0xff]  }
 0x321   : > { %3862 = vrot.lane.b32.xlu0 %v3861_v51, %s4312_s15  ;;  %v1841_v51 = vrot.slane %v1836_v48, %v559_v57  ;;  %v1849_v57 = vrot.slane %v1836_v48, %v567_v56 }
 0x323   : > { %3867 = vrot.lane.b32.xlu1 %v3866_v53, %s4312_s15 }
 0x38f   : > { %v3853_v58 = vpop.permute.xlu0 %3852 }
 0x390   : > { %v3855_v59 = vunpack.i.h.bf16 %v3853_v58  ;;  %v3854_v60 = vunpack.i.l.bf16 %v3853_v58 }
 0x391   : > { %v3858_v61 = vpop.permute.xlu1 %3857 }
 0x392   : > { %v3859_v62 = vunpack.i.l.bf16 %v3858_v61  ;;  %v1702_v63 = vsel %vm1679_vm7, %v1634_v41, %v3854_v60  ;;  %v1703_v0 = vsel %vm1679_vm7, %v1638_v50, %v3855_v59  ;;  %v3860_v1 = vunpack.i.h.bf16 %v3858_v61  ;;  %v4226_v41 = vld [vmem:[%s5462_s4 + $0x2d8] ss:$12 sps:$4 sm:$0xff]  }
 0x393   : > { %v3863_v2 = vpop.permute.xlu0 %3862  ;;  %v1707_v3 = vpack.c.bf16 %v1703_v0, %v1702_v63  ;;  %v4236_v50 = vld [vmem:[%s5462_s4 + $0xf8] ss:$12 sps:$4 sm:$0xff]  }
 0x394   : > { %v3865_v5 = vunpack.i.h.bf16 %v3863_v2  ;;  %v3864_v6 = vunpack.i.l.bf16 %v3863_v2  ;;  %v1680_v46 = vsel %vm1679_vm7, %v3854_v60, %v3859_v62  ;;  %v1681_v12 = vsel %vm1679_vm7, %v3855_v59, %v3860_v1 }
 0x395   : > { %2403 = vmatprep.mubr.bf16.mxu1 %v1707_v3  ;;  %v3868_v45 = vpop.permute.xlu1 %3867  ;;  %v1845_v2 = vrot.slane %v1836_v48, %v563_v54 }
 0x396   : > { %v3870_v10 = vunpack.i.h.bf16 %v3868_v45  ;;  %v3869_v11 = vunpack.i.l.bf16 %v3868_v45  ;;  %2404 = vmatmul.mubr.bf16.vlgmr.msra.gmra.mxu1 %v5100_v32  ;;  %v1696_v14 = vsel %vm1550_vm4, %v3864_v6, %v3865_v5  ;;  %v1704_v17 = vsel %vm1550_vm4, %v1680_v46, %v3864_v6 }
 0x397   : > { %3672 = vmatpush3.bf16.msra.mxu1 %v4216_v4  ;;  %2489 = vmatprep.mubr.bf16.mxu1 %v1707_v3 }
 0x398   : > { %v1697_v55 = vsel %vm1550_vm4, %v3869_v11, %v3870_v10  ;;  %v1705_v18 = vsel %vm1550_vm4, %v1681_v12, %v3869_v11  ;;  %3673 = vmatprep.subr.bf16.mxu1 %v4220_v7 }
 0x399   : > { %v1708_v20 = vpack.c.bf16 %v1705_v18, %v1704_v17  ;;  %v1709_v21 = vpack.c.bf16 %v1697_v55, %v1696_v14 }
 0x39b   : > { %3674 = vmatpush3.bf16.msra.mxu1 %v4221_v13  ;;  %3611 = vmatprep.mubr.msk.bf16.mxu0 %vm2357_vm8, %v1709_v21 }
 0x39c   : > { %2447 = vmatmul.mubr.bf16.vlgmr.msra.gmra.mxu0 %v1708_v20  ;;  %3675 = vmatprep.subr.bf16.mxu1 %v4224_v19 }
 0x39d   : > { %3694 = vmatpush3.bf16.msra.mxu0 %v4223_v22  ;;  %3612 = vmatprep.mubr.msk.bf16.mxu0 %vm2357_vm8, %v1709_v21 }
 0x39e   : > { %3695 = vmatprep.subr.bf16.mxu0 %v4226_v41 }
 0x39f   : > { %3676 = vmatpush3.bf16.msra.mxu1 %v4225_v23 }
 0x3a0   : > { %3677 = vmatprep.subr.bf16.mxu1 %v4228_v24 }
 0x3a1   : > { %3696 = vmatpush3.bf16.msra.mxu0 %v4227_v25  ;;  %v4250_v25 = vld [vmem:[%s5464_s6 + $0x38] sm:$0xff]  }
 0x3a2   : > { %3697 = vmatprep.subr.bf16.mxu0 %v4230_v26 }
 0x3a3   : > { %3678 = vmatpush3.bf16.msra.mxu1 %v4229_v27  ;;  %v4251_v27 = vld [vmem:[%s5464_s6 + $0x30] sm:$0xff]  }
 0x3a4   : > { %3679 = vmatprep.subr.bf16.mxu1 %v4232_v28  ;;  %v4252_v28 = vld [vmem:[%s5464_s6 + $0x28] sm:$0xff]  }
 0x3a5   : > { %3698 = vmatpush3.bf16.msra.mxu0 %v4231_v29  ;;  %v4253_v29 = vld [vmem:[%s5464_s6 + $0x20] sm:$0xff]  }
 0x3a6   : > { %3699 = vmatprep.subr.bf16.mxu0 %v4234_v30  ;;  %v4254_v30 = vld [vmem:[%s5464_s6 + $0x18] sm:$0xff]  }
 0x3a7   : > { %3680 = vmatpush3.bf16.msra.mxu1 %v4233_v31  ;;  %v4255_v31 = vld [vmem:[%s5464_s6 + $0x10] sm:$0xff]  }
 0x3a8   : > { %3681 = vmatprep.subr.bf16.mxu1 %v4236_v50  ;;  %v4256_v50 = vld [vmem:[%s5464_s6 + $0x8] sm:$0xff]  }
 0x3a9   : > { %3700 = vmatpush3.bf16.msra.mxu0 %v4235_v33  ;;  %v4257_v33 = vld [vmem:[%s5464_s6] sm:$0xff]  }
 0x3aa   : > { %3701 = vmatprep.subr.bf16.mxu0 %v4238_v8 }
 0x3ab   : > { %3682 = vmatpush3.bf16.msra.mxu1 %v4237_v15  ;;  %v4258_v15 = vld [vmem:[%s5464_s6 + $0x48] sm:$0xff]  }
 0x3ac   : > { %3683 = vmatprep.subr.bf16.mxu1 %v4240_v35 }
 0x3ad   : > { %3702 = vmatpush3.bf16.msra.mxu0 %v4239_v36 }
 0x3ae   : > { %3703 = vmatprep.subr.bf16.mxu0 %v4242_v37 }
 0x3af   : > { %3684 = vmatpush3.bf16.msra.mxu1 %v4241_v38  ;;  %v4259_v38 = vld [vmem:[%s5464_s6 + $0x40] sm:$0xff]  }
 0x3b0   : > { %3685 = vmatprep.subr.bf16.mxu1 %v4244_v39 }
 0x3b1   : > { %3704 = vmatpush3.bf16.msra.mxu0 %v4243_v9 }
 0x3b2   : > { %3705 = vmatprep.subr.bf16.mxu0 %v4246_v16 }
 0x3b3   : > { %3686 = vmatpush3.bf16.msra.mxu1 %v4245_v40 }
 0x3b4   : > { %2685 = vmatprep.subr.bf16.mxu1 %v4308_v34 }
 0x3b5   : > { %3706 = vmatpush3.bf16.msra.mxu0 %v4247_v43 }
 0x3b6   : > { %2490 = vmatmul.mubr.bf16.vlgmr.msra.gmra.mxu1 %v5100_v32  ;;  %3707 = vmatprep.subr.bf16.mxu0 %v4248_v44 }
 0x3b7   : > { %2686 = vmatpush1.bf16.msra.mxu1 %v4250_v25  ;;  %v4278_v25 = vld [vmem:[%s5465_s7 + $0x10] sm:$0xff]  }
 0x3b8   : > { %2687 = vmatprep.subr.bf16.mxu1 %v4308_v34 }
 0x3b9   : > { %3708 = vmatpush3.bf16.msra.mxu0 %v4249_v47 }
 0x3bb   : > { %2688 = vmatpush1.bf16.msra.mxu1 %v4251_v27  ;;  %v4279_v27 = vld [vmem:[%s5465_s7 + $0x48] sm:$0xff]  }
 0x3bc   : > { %2531 = vmatmul.mubr.bf16.vlgmr.msra.gmra.mxu0 %v1708_v20  ;;  %2689 = vmatprep.subr.bf16.mxu1 %v4308_v34 }
 0x3bf   : > { %2690 = vmatpush1.bf16.msra.mxu1 %v4252_v28  ;;  %v4280_v28 = vld [vmem:[%s5465_s7 + $0x80] sm:$0xff]  }
 0x3c0   : > { %2691 = vmatprep.subr.bf16.mxu1 %v4308_v34 }
 0x3c3   : > { %2692 = vmatpush1.bf16.msra.mxu1 %v4253_v29 }
 0x3c4   : > { %2693 = vmatprep.subr.bf16.mxu1 %v4308_v34 }
 0x3c7   : > { %2694 = vmatpush1.bf16.msra.mxu1 %v4254_v30  ;;  %v4281_v30 = vld [vmem:[%s5465_s7 + $0x8] sm:$0xff]  }
 0x3c8   : > { %2695 = vmatprep.subr.bf16.mxu1 %v4308_v34 }
 0x3cb   : > { %2696 = vmatpush1.bf16.msra.mxu1 %v4255_v31 }
 0x3cc   : > { %2697 = vmatprep.subr.bf16.mxu1 %v4308_v34 }
 0x3cf   : > { %2698 = vmatpush1.bf16.msra.mxu1 %v4256_v50  ;;  %v4282_v50 = vld [vmem:[%s5465_s7 + $0x40] sm:$0xff]  }
 0x3d0   : > { %2699 = vmatprep.subr.bf16.mxu1 %v4308_v34 }
 0x3d3   : > { %2700 = vmatpush1.bf16.msra.mxu1 %v4257_v33  ;;  %v4283_v33 = vld [vmem:[%s5465_s7 + $0xc0] sm:$0xff]  }
 0x3d4   : > { %2713 = vmatprep.subr.bf16.mxu1 %v4308_v34 }
 0x3d7   : > { %2714 = vmatpush2.bf16.msra.mxu1 %v4258_v15 }
 0x3d8   : > { %2715 = vmatprep.subr.bf16.mxu1 %v4308_v34 }
 0x3db   : > { %2716 = vmatpush2.bf16.msra.mxu1 %v4259_v38 }
 0x3dc   : > { %3047 = vmatprep.subr.bf16.mxu1 %v4308_v34 }
 0x456   : > { %v2405_v49 = vpop.f32.mrf.mxu1 }
 0x457   : > { %v2406_v53 = vadd.f32 %v2405_v49, %v1841_v51 }
 0x458   : > { %v2407_v52 = vpop.f32.mrf.mxu1 }
 0x459   : > { %v2408_v7 = vadd.f32 %v2407_v52, %v1845_v2 }
 0x45a   : > { %v2409_v58 = vpop.f32.mrf.mxu1 }
 0x45b   : > { %v2410_v62 = vadd.f32 %v2409_v58, %v1841_v51 }
 0x45c   : > { %v2448_v59 = vpop.f32.mrf.mxu0  ;;  %v2411_v0 = vpop.f32.mrf.mxu1 }
 0x45d   : > { %v5224_v60 = vadd.f32 %v2448_v59, %v2406_v53  ;;  %v2412_v55 = vadd.f32 %v2411_v0, %v1845_v2 }
 0x45e   : > { %v2450_v61 = vpop.f32.mrf.mxu0 }
 0x45f   : > { %v2451_v10 = vadd.f32 %v2450_v61, %v2408_v7  ;;  %v2539_v40 = vmax.f32 %v5224_v60, 0.0 }
 0x460   : > { %v2452_v32 = vpop.f32.mrf.mxu0 }
 0x461   : > { %v5226_v63 = vadd.f32 %v2452_v32, %v2410_v62  ;;  %v2540_v19 = vmax.f32 %v2451_v10, 0.0 }
 0x462   : > { %v2454_v4 = vpop.f32.mrf.mxu0 }
 0x463   : > { %v2455_v20 = vadd.f32 %v2454_v4, %v2412_v55  ;;  %v2542_v43 = vmax.f32 %v5226_v63, 0.0  ;;  %v4266_v55 = vld [vmem:[%s5465_s7 + $0x30] sm:$0xff]  }
 0x465   : > { %v2543_v23 = vmax.f32 %v2455_v20, 0.0  ;;  %v4270_v20 = vld [vmem:[%s5465_s7 + $0x60] sm:$0xff]  }
 0x476   : > { %v3687_v1 = vpop.f32.mrf.mxu1 }
 0x478   : > { %v3688_v3 = vpop.f32.mrf.mxu1 }
 0x479   : > { %v3689_v6 = vadd.f32 %v3688_v3, %v3687_v1 }
 0x47a   : > { %v3690_v5 = vpop.f32.mrf.mxu1 }
 0x47b   : > { %v2492_v12 = vadd.f32 %v3689_v6, %v1849_v57 }
 0x47c   : > { %v3691_v46 = vpop.f32.mrf.mxu1  ;;  %v3709_v45 = vpop.f32.mrf.mxu0 }
 0x47d   : > { %v3692_v13 = vadd.f32 %v3691_v46, %v3690_v5 }
 0x47e   : > { %v3710_v11 = vpop.f32.mrf.mxu0 }
 0x47f   : > { %v3711_v14 = vadd.f32 %v3710_v11, %v3709_v45  ;;  %v2495_v21 = vadd.f32 %v3692_v13, %v1849_v57  ;;  %v4260_v11 = vld [vmem:[%s5465_s7 + $0xb8] sm:$0xff]  }
 0x480   : > { %v3712_v17 = vpop.f32.mrf.mxu0  ;;  %v4263_v13 = vld [vmem:[%s5465_s7 + $0x38] sm:$0xff]  }
 0x481   : > { %v2533_v18 = vadd.f32 %v3711_v14, %v2492_v12  ;;  %v4261_v12 = vld [vmem:[%s5465_s7 + $0x78] sm:$0xff]   ;;  %v4264_v14 = vld [vmem:[%s5465_s7 + $0x70] sm:$0xff]  }
 0x482   : > { %v3713_v54 = vpop.f32.mrf.mxu0  ;;  %3715 = vmatprep.subr.bf16.mxu0 %v4261_v12 }
 0x483   : > { %v2541_v22 = vmax.f32 %v2533_v18, 0.0  ;;  %v3714_v41 = vadd.f32 %v3713_v54, %v3712_v17  ;;  %v4262_v17 = vld [vmem:[%s5465_s7 + $0xb0] sm:$0xff]   ;;  %3716 = vmatpush3.bf16.msra.mxu0 %v4263_v13  ;;  %v4267_v18 = vld [vmem:[%s5465_s7 + $0x68] sm:$0xff]   ;;  %v4285_v13 = vld [vmem:[%s5467_s9 + $0x38] ss:$0 sps:$4 sm:$0xff]  }
 0x484   : > { %3717 = vmatprep.subr.bf16.mxu0 %v4264_v14  ;;  %v4269_v54 = vld [vmem:[%s5465_s7 + $0x28] sm:$0xff]  }
 0x485   : > { %v2536_v42 = vadd.f32 %v3714_v41, %v2495_v21  ;;  %v3871_v56 = vpack.i.bf16 %v2541_v22, %v2540_v19  ;;  %v4268_v21 = vld [vmem:[%s5465_s7 + $0xa0] sm:$0xff]   ;;  %v4273_v41 = vld [vmem:[%s5465_s7 + $0x58] sm:$0xff]  }
 0x486   : > { %v4272_v22 = vld [vmem:[%s5465_s7 + $0x20] sm:$0xff]  }
 0x487   : > { %v2544_v24 = vmax.f32 %v2536_v42, 0.0  ;;  %3872 = vrot.lane.b32.xlu0 %v3871_v56, %s4313_s18  ;;  %3718 = vmatpush3.bf16.msra.mxu0 %v4266_v55  ;;  %v4271_v42 = vld [vmem:[%s5465_s7 + $0x98] sm:$0xff]  }
 0x488   : > { %3719 = vmatprep.subr.bf16.mxu0 %v4267_v18  ;;  %v4275_v56 = vld [vmem:[%s5465_s7 + $0x18] sm:$0xff]  }
 0x489   : > { %v3876_v26 = vpack.i.bf16 %v2544_v24, %v2543_v23  ;;  %v4274_v24 = vld [vmem:[%s5465_s7 + $0x90] sm:$0xff]  }
 0x48b   : > { %3877 = vrot.lane.b32.xlu1 %v3876_v26, %s4313_s18  ;;  %3720 = vmatpush3.bf16.msra.mxu0 %v4269_v54  ;;  %v4277_v26 = vld [vmem:[%s5465_s7 + $0x88] sm:$0xff]  }
 0x48c   : > { %3721 = vmatprep.subr.bf16.mxu0 %v4270_v20 }
 0x48f   : > { %3722 = vmatpush3.bf16.msra.mxu0 %v4272_v22  ;;  %v3162_v22 = vsel %vm2361_vm5, %v4285_v13, 0 }
 0x490   : > { %3723 = vmatprep.subr.bf16.mxu0 %v4273_v41  ;;  %v4286_v41 = vld [vmem:[%s5467_s9 + $0x30] sm:$0xff]  }
 0x493   : > { %3724 = vmatpush3.bf16.msra.mxu0 %v4275_v56  ;;  %v4288_v56 = vld [vmem:[%s5467_s9 + $0x20] sm:$0xff]  }
 0x4f9   : > { %v3873_v8 = vpop.permute.xlu0 %3872 }
 0x4fa   : > { %v3875_v35 = vunpack.i.h.bf16 %v3873_v8  ;;  %v3874_v36 = vunpack.i.l.bf16 %v3873_v8 }
 0x4fc   : > { %v2558_v39 = vsel %vm2557_vm9, %v3874_v36, %v3875_v35  ;;  %v2565_v44 = vmax.f32 %v2540_v19, %v3875_v35  ;;  %v4265_v19 = vld [vmem:[%s5465_s7 + $0xa8] sm:$0xff]   ;;  %v4284_v36 = vld [vmem:[%s5465_s7] sm:$0xff]  }
 0x4fd   : > { %v3878_v37 = vpop.permute.xlu1 %3877  ;;  %v2564_v49 = vmax.f32 %v2539_v40, %v2558_v39 }
 0x4fe   : > { %v3880_v9 = vunpack.i.h.bf16 %v3878_v37  ;;  %v3879_v16 = vunpack.i.l.bf16 %v3878_v37 }
 0x500   : > { %v2567_v47 = vmax.f32 %v2543_v23, %v3880_v9  ;;  %v2559_v48 = vsel %vm2557_vm9, %v3879_v16, %v3880_v9  ;;  %v4276_v23 = vld [vmem:[%s5465_s7 + $0x50] sm:$0xff]  }
 0x501   : > { %v2566_v51 = vmax.f32 %v2542_v43, %v2559_v48  ;;  %3725 = vmatprep.subr.bf16.mxu0 %v4276_v23  ;;  %v4289_v23 = vld [vmem:[%s5467_s9 + $0x18] sm:$0xff]  }
 0x502   : > { %v3881_v52 = vpack.i.bf16 %v2567_v47, %v2565_v44  ;;  %3726 = vmatpush3.bf16.msra.mxu0 %v4278_v25  ;;  %v4291_v25 = vld [vmem:[%s5467_s9 + $0x8] sm:$0xff]  }
 0x503   : > { %v3886_v53 = vpack.i.bf16 %v2566_v51, %v2564_v49  ;;  %3727 = vmatprep.subr.bf16.mxu0 %v4279_v27  ;;  %v4293_v27 = vld [vmem:[%s5469_s11 + $0x28] ss:$0 sps:$4 sm:$0x33]  }
 0x504   : > { %3882 = vrot.lane.b32.xlu0 %v3881_v52, %s4309_s29 }
 0x505   : > { %3887 = vrot.lane.b32.xlu1 %v3886_v53, %s4314_s14  ;;  %s4317_s14 = smov 64  }
 0x506   : > { %3728 = vmatpush3.bf16.msra.mxu0 %v4281_v30  ;;  %v4295_v30 = vld [vmem:[%s5469_s11 + $0x18] sm:$0xff]  }
 0x507   : > { %3729 = vmatprep.subr.bf16.mxu0 %v4282_v50 }
 0x508   : > { %3892 = vrot.lane.b32.xlu0 %v3886_v53, %s4309_s29  ;;  %s4318_s29 = smov 112  }
 0x50a   : > { %3730 = vmatpush3.bf16.msra.mxu0 %v4284_v36 }
 0x576   : > { %v3883_v58 = vpop.permute.xlu0 %3882 }
 0x577   : > { %v3885_v59 = vunpack.i.h.bf16 %v3883_v58  ;;  %v3884_v60 = vunpack.i.l.bf16 %v3883_v58  ;;  %v3888_v61 = vpop.permute.xlu1 %3887 }
 0x578   : > { %v3890_v62 = vunpack.i.h.bf16 %v3888_v61  ;;  %v3889_v32 = vunpack.i.l.bf16 %v3888_v61 }
 0x57a   : > { %v2594_v63 = vsel %vm2592_vm10, %v3885_v59, %v3890_v62  ;;  %v2593_v0 = vsel %vm2592_vm10, %v3884_v60, %v3889_v32  ;;  %v3893_v1 = vpop.permute.xlu0 %3892 }
 0x57b   : > { %v2598_v2 = vmax.f32 %v2567_v47, %v2594_v63  ;;  %v2596_v3 = vmax.f32 %v2565_v44, %v2593_v0  ;;  %v3895_v4 = vunpack.i.h.bf16 %v3893_v1  ;;  %v3894_v5 = vunpack.i.l.bf16 %v3893_v1 }
 0x57d   : > { %v2581_v57 = vsel %vm1269_vm2, %v3895_v4, %v3885_v59  ;;  %v2580_v6 = vsel %vm1269_vm2, %v3894_v5, %v3884_v60  ;;  %v2600_v7 = vpack.c.bf16 %v2598_v2, %v2596_v3  ;;  %v4316_v60 = vmov 0.0  }
 0x57e   : > { %v2597_v46 = vmax.f32 %v2566_v51, %v2581_v57  ;;  %v2595_v45 = vmax.f32 %v2564_v49, %v2580_v6  ;;  %3753 = vmatprep.subr.bf16.mxu0 %v4316_v60  ;;  %vm3259_vm2 = vcmask 687104  }
 0x57f   : > { %3623 = vmatprep.mubr.msk.bf16.mxu1 %vm2681_vm11, %v2600_v7 }
 0x580   : > { %v2599_v10 = vpack.c.bf16 %v2597_v46, %v2595_v45 }
 0x582   : > { %2718 = vmatmul.mubr.bf16.vlgmr.msra.gmra.mxu1 %v2599_v10 }
 0x583   : > { %3048 = vmatpush1.bf16.msra.mxu1 %v4260_v11 }
 0x584   : > { %3049 = vmatprep.subr.bf16.mxu1 %v4308_v34 }
 0x587   : > { %3050 = vmatpush1.bf16.msra.mxu1 %v4262_v17 }
 0x588   : > { %3051 = vmatprep.subr.bf16.mxu1 %v4308_v34 }
 0x58b   : > { %3052 = vmatpush1.bf16.msra.mxu1 %v4265_v19 }
 0x58c   : > { %3053 = vmatprep.subr.bf16.mxu1 %v4308_v34 }
 0x58f   : > { %3054 = vmatpush1.bf16.msra.mxu1 %v4268_v21 }
 0x590   : > { %3055 = vmatprep.subr.bf16.mxu1 %v4308_v34 }
 0x593   : > { %3056 = vmatpush1.bf16.msra.mxu1 %v4271_v42  ;;  %v4287_v42 = vld [vmem:[%s5467_s9 + $0x28] sm:$0xff]  }
 0x594   : > { %3057 = vmatprep.subr.bf16.mxu1 %v4308_v34 }
 0x597   : > { %3058 = vmatpush1.bf16.msra.mxu1 %v4274_v24  ;;  %v4290_v24 = vld [vmem:[%s5467_s9 + $0x10] sm:$0xff]  }
 0x598   : > { %3059 = vmatprep.subr.bf16.mxu1 %v4308_v34 }
 0x59b   : > { %3060 = vmatpush1.bf16.msra.mxu1 %v4277_v26  ;;  %v4292_v26 = vld [vmem:[%s5467_s9] sm:$0xff]  }
 0x59c   : > { %3061 = vmatprep.subr.bf16.mxu1 %v4308_v34 }
 0x59f   : > { %3062 = vmatpush1.bf16.msra.mxu1 %v4280_v28  ;;  %v3265_v28 = vsel %vm3263_vm1, %v4293_v27, 0 }
 0x5a0   : > { %3077 = vmatprep.subr.bf16.mxu1 %v4308_v34 }
 0x5a3   : > { %3078 = vmatpush2.bf16.msra.mxu1 %v4283_v33 }
 0x5a4   : > { %3773 = vmatprep.subr.bf16.mxu1 %v4316_v60 }
 0x642   : > { %v5349_v29 = vpop.f32.mrf.mxu1 }
 0x643   : > { %v2728_v8 = vrot.slane %v5349_v29, 1  ;;  %v2734_v15 = vrot.slane %v5349_v29, 2  ;;  %v2741_v9 = vrot.slane %v5349_v29, 3  ;;  %v2747_v16 = vrot.slane %v5349_v29, 4 }
 0x644   : > { %v2721_v31 = vpop.f32.mrf.mxu1 }
 0x646   : > { %v2722_v35 = vpop.f32.mrf.mxu1 }
 0x647   : > { %v2729_v37 = vrot.slane %v2722_v35, 1  ;;  %v2735_v38 = vrot.slane %v2722_v35, 2  ;;  %v2742_v34 = vrot.slane %v2722_v35, 3  ;;  %v2748_v39 = vrot.slane %v2722_v35, 4 }
 0x648   : > { %v2724_v40 = vpop.f32.mrf.mxu1 }
 0x649   : > { %v2736_v43 = vsel %vm1656_vm6, %v2734_v15, %v2735_v38  ;;  %v2739_v44 = vsel %vm1656_vm6, %v2735_v38, %v2734_v15  ;;  %v2730_v47 = vsel %vm449_vm0, %v2728_v8, %v2729_v37  ;;  %v2733_v48 = vsel %vm449_vm0, %v2729_v37, %v2728_v8  ;;  %v3624_v8 = vld [vmem:[%s5466_s8] ss:$0 sm:$0xff] }
 0x64a   : > { %v3901_v49 = vpack.i.bf16 %v2739_v44, %v2736_v43  ;;  %v3896_v51 = vpack.i.bf16 %v2733_v48, %v2730_v47  ;;  %v2749_v52 = vsel %vm2361_vm5, %v2747_v16, %v2748_v39  ;;  %v2752_v53 = vsel %vm2361_vm5, %v2748_v39, %v2747_v16 }
 0x64b   : > { %v2743_v58 = vsel %vm2740_vm12, %v2741_v9, %v2742_v34  ;;  %v2746_v59 = vsel %vm2740_vm12, %v2742_v34, %v2741_v9  ;;  %v3911_v61 = vpack.i.bf16 %v2752_v53, %v2749_v52  ;;  %vm4319_vm0 = vmmov 0   ;;  %v4298_v52 = vld [vmem:[%s5469_s11] sm:$0xff]  }
 0x64c   : > { %3902 = vrot.lane.b32.xlu0 %v3901_v49, %s4315_s26  ;;  %3897 = vrot.lane.b32.xlu1 %v3896_v51, %s4312_s15  ;;  %v3906_v62 = vpack.i.bf16 %v2746_v59, %v2743_v58  ;;  %v4296_v49 = vld [vmem:[%s5469_s11 + $0x10] sm:$0xff]   ;;  %v4297_v51 = vld [vmem:[%s5469_s11 + $0x8] sm:$0xff]  }
 0x64d   : > { %v3651_v53 = vld [vmem:[%s5468_s10] ss:$0 sm:$0xff] }
 0x650   : > { %3912 = vrot.lane.b32.xlu0 %v3911_v61, %s4317_s14  ;;  %3907 = vrot.lane.b32.xlu1 %v3906_v62, %s4318_s29 }
 0x6be   : > { %v3903_v32 = vpop.permute.xlu0 %3902  ;;  %v3898_v63 = vpop.permute.xlu1 %3897 }
 0x6bf   : > { %v3905_v0 = vunpack.i.h.bf16 %v3903_v32  ;;  %v3904_v1 = vunpack.i.l.bf16 %v3903_v32  ;;  %v3900_v2 = vunpack.i.h.bf16 %v3898_v63  ;;  %v3899_v3 = vunpack.i.l.bf16 %v3898_v63 }
 0x6c1   : > { %v2782_v45 = vsel %vm1550_vm4, %v2722_v35, %v3900_v2  ;;  %v2784_v10 = vsel %vm2681_vm11, %v3900_v2, %v3905_v0  ;;  %v2781_v11 = vsel %vm1550_vm4, %v5349_v29, %v3899_v3  ;;  %v2783_v12 = vsel %vm2681_vm11, %v3899_v3, %v3904_v1  ;;  %v4294_v29 = vld [vmem:[%s5469_s11 + $0x20] sm:$0xff]  }
 0x6c2   : > { %v3913_v4 = vpop.permute.xlu0 %3912  ;;  %v3908_v5 = vpop.permute.xlu1 %3907  ;;  %v2791_v21 = vpack.c.bf16 %v2782_v45, %v2781_v11  ;;  %v3661_v2 = vld [vmem:[%s5470_s12] ss:$0 sm:$0xff] }
 0x6c3   : > { %v3915_v57 = vunpack.i.h.bf16 %v3913_v4  ;;  %v3914_v6 = vunpack.i.l.bf16 %v3913_v4  ;;  %v3910_v7 = vunpack.i.h.bf16 %v3908_v5  ;;  %v3909_v46 = vunpack.i.l.bf16 %v3908_v5 }
 0x6c5   : > { %v2794_v14 = vpack.c.bf16 %v3915_v57, %v3914_v6  ;;  %v2790_v17 = vsel %vm2788_vm13, %v3910_v7, %v3915_v57  ;;  %v2789_v55 = vsel %vm2788_vm13, %v3909_v46, %v3914_v6  ;;  %v2786_v18 = vsel %vm2785_vm15, %v2783_v12, %v3909_v46 }
 0x6c6   : > { %v2793_v19 = vpack.c.bf16 %v2790_v17, %v2789_v55  ;;  %v2787_v54 = vsel %vm2785_vm15, %v2784_v10, %v3910_v7 }
 0x6c7   : > { %3650 = vmatprep.mubr.msk.bf16.mxu1 %vm3002_vm14, %v2794_v14  ;;  %v2792_v20 = vpack.c.bf16 %v2787_v54, %v2786_v18 }
 0x6c8   : > { %3080 = vmatmul.mubr.bf16.vlgmr.msra.gmra.mxu1 %v2793_v19 }
 0x6c9   : > { %3038 = vmatprep.mubr.bf16.mxu0 %v2792_v20  ;;  %3785 = vmatprep.mubr.msk.bf16.mxu1 %vm4319_vm0, %v4316_v60 }
 0x6ca   : > { %3039 = vmatmul.mubr.bf16.vlgmr.msra.gmra.mxu0 %v2791_v21  ;;  %3774 = vmatpush3.bf16.msra.mxu1 %v3265_v28 }
 0x6cb   : > { %3754 = vmatpush3.bf16.msra.mxu0 %v3162_v22  ;;  %3769 = vmatprep.mubr.msk.bf16.mxu0 %vm4319_vm0, %v4316_v60 }
 0x6cc   : > { %3755 = vmatprep.subr.bf16.mxu0 %v4316_v60  ;;  %3775 = vmatprep.subr.bf16.mxu1 %v4316_v60 }
 0x6ce   : > { %3776 = vmatpush3.bf16.msra.mxu1 %v4294_v29 }
 0x6cf   : > { %3756 = vmatpush3.bf16.msra.mxu0 %v4286_v41  ;;  %3777 = vmatprep.subr.bf16.mxu1 %v4316_v60 }
 0x6d0   : > { %3757 = vmatprep.subr.bf16.mxu0 %v4316_v60 }
 0x6d2   : > { %3778 = vmatpush3.bf16.msra.mxu1 %v4295_v30 }
 0x6d3   : > { %3758 = vmatpush3.bf16.msra.mxu0 %v4287_v42  ;;  %3779 = vmatprep.subr.bf16.mxu1 %v4316_v60 }
 0x6d4   : > { %3759 = vmatprep.subr.bf16.mxu0 %v4316_v60 }
 0x6d6   : > { %3780 = vmatpush3.bf16.msra.mxu1 %v4296_v49 }
 0x6d7   : > { %3760 = vmatpush3.bf16.msra.mxu0 %v4288_v56  ;;  %3781 = vmatprep.subr.bf16.mxu1 %v4316_v60 }
 0x6d8   : > { %3761 = vmatprep.subr.bf16.mxu0 %v4316_v60 }
 0x6da   : > { %3782 = vmatpush3.bf16.msra.mxu1 %v4297_v51 }
 0x6db   : > { %3762 = vmatpush3.bf16.msra.mxu0 %v4289_v23  ;;  %3783 = vmatprep.subr.bf16.mxu1 %v4316_v60 }
 0x6dc   : > { %3763 = vmatprep.subr.bf16.mxu0 %v4316_v60 }
 0x6de   : > { %3784 = vmatpush3.bf16.msra.mxu1 %v4298_v52 }
 0x6df   : > { %3764 = vmatpush3.bf16.msra.mxu0 %v4290_v24 }
 0x6e0   : > { %3765 = vmatprep.subr.bf16.mxu0 %v4316_v60 }
 0x6e3   : > { %3766 = vmatpush3.bf16.msra.mxu0 %v4291_v25 }
 0x6e4   : > { %3767 = vmatprep.subr.bf16.mxu0 %v4316_v60 }
 0x6e7   : > { %3768 = vmatpush3.bf16.msra.mxu0 %v4292_v26 }
 0x788   : > { %v3081_v31 = vpop.f32.mrf.mxu1 }
 0x78a   : > { %v3731_v50 = vpop.f32.mrf.mxu0  ;;  %v3083_v33 = vpop.f32.mrf.mxu1 }
 0x78c   : > { %v3732_v15 = vpop.f32.mrf.mxu0  ;;  %v3084_v35 = vpop.f32.mrf.mxu1 }
 0x78d   : > { %v3733_v36 = vadd.f32 %v3732_v15, %v3731_v50 }
 0x78e   : > { %v3734_v37 = vpop.f32.mrf.mxu0  ;;  %v3086_v38 = vpop.f32.mrf.mxu1 }
 0x78f   : > { %v3041_v34 = vadd.f32 %v3733_v36, %v3624_v8 }
 0x790   : > { %v3735_v39 = vpop.f32.mrf.mxu0 }
 0x791   : > { %v3736_v9 = vadd.f32 %v3735_v39, %v3734_v37  ;;  %v3082_v16 = vadd.f32 %v3081_v31, %v3041_v34 }
 0x793   : > { %v3044_v40 = vadd.f32 %v3736_v9, %v3624_v8  ;;  %v3088_v44 = vmax.f32 %v3082_v16, 0.0 }
 0x795   : > { %v3085_v43 = vadd.f32 %v3084_v35, %v3044_v40 }
 0x797   : > { %v3089_v47 = vmax.f32 %v3085_v43, 0.0 }
 0x799   : > { %v3090_v48 = vpack.c.bf16 %v3089_v47, %v3088_v44 }
 0x79b   : > { %3770 = vmatmul.mubr.msk.bf16.vlgmr.msra.gmra.mxu0 %vm2357_vm8, %v3090_v48 }
 0x85b   : > { %v3198_v58 = vpop.f32.mrf.mxu0 }
 0x85c   : > { %v3199_v61 = vadd.f32 %v3651_v53, %v3198_v58 }
 0x85d   : > { %v3771_v59 = vpop.f32.mrf.mxu0 }
 0x85e   : > { %v3205_v0 = vmax.f32 %v3199_v61, 0.0 }
 0x85f   : > { %v3201_v62 = vpop.f32.mrf.mxu0 }
 0x860   : > { %v3202_v32 = vadd.f32 %v3651_v53, %v3201_v62 }
 0x861   : > { %v3772_v63 = vpop.f32.mrf.mxu0 }
 0x862   : > { %v3206_v1 = vmax.f32 %v3202_v32, 0.0 }
 0x864   : > { %v3207_v60 = vpack.c.bf16 %v3206_v1, %v3205_v0 }
 0x866   : > { %3786 = vmatmul.mubr.msk.bf16.vlgmr.msra.gmra.mxu1 %vm3259_vm2, %v3207_v60 }
 0x926   : > { %v3301_v3 = vpop.f32.mrf.mxu1 }
 0x927   : > { %v3302_v4 = vadd.f32 %v3661_v2, %v3301_v3 }
 0x928   : > { %v3787_v5 = vpop.f32.mrf.mxu1 }
 0x929   : > { %3308 = vst [vmem:[%s442_s24] sm:$0xff] %v3302_v4 }
 0x92a   : > { %v3304_v57 = vpop.f32.mrf.mxu1 }
 0x92b   : > { %v3305_v6 = vadd.f32 %v3661_v2, %v3304_v57 }
 0x92c   : > { %v3788_v7 = vpop.f32.mrf.mxu1 }
 0x92d   : > { %3309 = vst [vmem:[%s442_s24 + $0x8] sm:$0xff] %v3305_v6 }
 0x92e PF: > { %s23_s25 = sadd.s32 1, %s4305_s25  }
 0x92f   : > { %p20_p4 = scmp.ge.s32.totalorder %s23_s25, 4  }
 0x931   :  { %22 = sbr.rel (!%p20_p4) target bundleno = 1 (0x1), region = 102 }

</bundles_post_ra>
